<compile_context>
chip_gen: v7x
topology: tpu7x:2x2x1
jax: 0.10.0
libtpu: 0.0.40
codegen_flags: <defaults>
</compile_context>

<pallas_src>
import functools

import jax
import jax.numpy as jnp
from jax.experimental import pallas as pl
from jax.experimental.pallas import tpu as pltpu


# ----------------------------------------------------------------------------
# Trace-time weight re-packing to the phase (space-to-depth) domain.
# ----------------------------------------------------------------------------
def phase_upconv_weight(wt):
    """ConvTranspose2d(in, out, 3, stride=2, pad=1, out_pad=1) -> phase-domain
    2x2-tap conv weight of shape (4*in, 4*out).

    wt: PyTorch layout (in_ch, out_ch, kh, kw).
    Row order matches im2col taps [(0,0),(0,1),(1,0),(1,1)] (pad bottom/right);
    column order is (2p+q)*out + co for output phase (p, q)."""
    cin, cout = wt.shape[0], wt.shape[1]
    # (output phase, tap offset) -> transposed-conv kernel index; (0,1) -> none
    kmap = {(0, 0): 1, (1, 0): 2, (1, 1): 0}
    weff = jnp.zeros((2, 2, cin, 4 * cout), jnp.float32)
    for p in (0, 1):
        for q in (0, 1):
            col0 = (2 * p + q) * cout
            for ay in (0, 1):
                for ax in (0, 1):
                    ky = kmap.get((p, ay))
                    kx = kmap.get((q, ax))
                    if ky is None or kx is None:
                        continue
                    weff = weff.at[ay, ax, :, col0:col0 + cout].set(wt[:, :, ky, kx])
    return weff.reshape(4 * cin, 4 * cout)


def phase_conv3x3_weight(w, groups):
    """Conv2d(k=3, pad=1, stride=1) on the fine grid -> equivalent 3x3/pad=1 conv
    on the coarse grid with 4x channels.

    w: PyTorch layout (Cout, Cin_total, 3, 3).
    groups: list of (fine_ch_start, n_ch, phase_base); the phase-domain input
      channel index of fine channel (fine_ch_start + c) at input phase s is
      phase_base + s*n_ch + c.  Returns (9 * sum(4*n_ch), 4*Cout) matmul weight
      matching an im2col over row-major 3x3 taps."""
    cout = w.shape[0]
    n_cin_d = sum(4 * nc for (_, nc, _) in groups)
    weff = jnp.zeros((3, 3, n_cin_d, 4 * cout), jnp.float32)
    for p in (0, 1):
        for q in (0, 1):
            col0 = (2 * p + q) * cout
            for dy in range(3):
                for dx in range(3):
                    ty, tx = p + dy - 1, q + dx - 1
                    dy2, sy = ty // 2 + 1, ty % 2      # coarse tap / input row phase
                    dx2, sx = tx // 2 + 1, tx % 2
                    s = 2 * sy + sx
                    for (f0, nc, base) in groups:
                        blk = jnp.transpose(w[:, f0:f0 + nc, dy, dx])   # (nc, Cout)
                        r0 = base + s * nc
                        weff = weff.at[dy2, dx2, r0:r0 + nc,
                                       col0:col0 + cout].set(blk)
    return weff.reshape(9 * n_cin_d, 4 * cout)


# ----------------------------------------------------------------------------
# Fused Pallas kernel: upconv (polyphase) + concat + 2x (conv3x3 + LeakyReLU),
# all on one (H, W, *) coarse-grid image resident in VMEM.
# ----------------------------------------------------------------------------
def _upblock_kernel(x1_ref, x2d_ref, wup_ref, bup_ref, w1_ref, b1_ref,
                    w2_ref, b2_ref, o_ref, *, H, W):
    def pad_hw(x, lo, hi):
        # Zero-pad spatial axes (0, 1) by (lo, hi) via concatenation (stays in VMEM).
        hh, ww, c = x.shape
        parts = []
        if lo:
            parts.append(jnp.zeros((hh, lo, c), x.dtype))
        parts.append(x)
        if hi:
            parts.append(jnp.zeros((hh, hi, c), x.dtype))
        x = jnp.concatenate(parts, axis=1) if len(parts) > 1 else x
        wp = ww + lo + hi
        parts = []
        if lo:
            parts.append(jnp.zeros((lo, wp, c), x.dtype))
        parts.append(x)
        if hi:
            parts.append(jnp.zeros((hi, wp, c), x.dtype))
        return jnp.concatenate(parts, axis=0) if len(parts) > 1 else x

    def conv(x, taps, lo, hi, w_ref_, b_ref_, slope, out_dtype):
        # im2col patch built once -> single deep-K MXU matmul (bf16 in, f32 acc),
        # bias + LeakyReLU fused into the epilogue.
        xp = pad_hw(x, lo, hi)
        patch = jnp.concatenate(
            [xp[dy:dy + H, dx:dx + W, :] for (dy, dx) in taps],
            axis=-1).reshape(H * W, -1)
        acc = jnp.dot(patch, w_ref_[...], preferred_element_type=jnp.float32)
        acc = acc + b_ref_[...]                               # (1, Cout_d) broadcast
        if slope != 1.0:
            acc = jnp.where(acc >= 0.0, acc, slope * acc)     # LeakyReLU
        return acc.reshape(H, W, acc.shape[-1]).astype(out_dtype)

    taps2 = [(0, 0), (0, 1), (1, 0), (1, 1)]
    taps3 = [(dy, dx) for dy in range(3) for dx in range(3)]

    x1 = x1_ref[0]                                   # (H, W, Cin)      bf16
    x2d = x2d_ref[0]                                 # (H, W, 4*C2)     bf16

    # ConvTranspose2d, polyphase: 4-tap conv on the original grid, 4x out chans.
    up_d = conv(x1, taps2, 0, 1, wup_ref, bup_ref, 1.0, jnp.bfloat16)   # (H,W,4*Cin)
    # torch.cat([x2, upconved], dim=1) == lane concat in the phase domain.
    xin = jnp.concatenate([x2d, up_d], axis=-1)               # (H, W, 4*CR)  bf16
    # CRblock: two fused Conv3x3 + LeakyReLU(0.2).
    h = conv(xin, taps3, 1, 1, w1_ref, b1_ref, 0.2, jnp.bfloat16)       # (H,W,4*Cout)
    h = conv(h, taps3, 1, 1, w2_ref, b2_ref, 0.2, o_ref.dtype)          # (H,W,4*Cout)
    o_ref[0] = h


# ----------------------------------------------------------------------------
# Public forward: NCHW in / NCHW out (PyTorch convention).
# ----------------------------------------------------------------------------
def upblock_forward(params, x1_nchw, x2_nchw):
    N, Cin, H, W = x1_nchw.shape
    C2 = x2_nchw.shape[1]
    CR = C2 + Cin
    Cout = params["w1"].shape[0]

    # --- boundary layout plumbing (single fused XLA copies) -----------------
    # Activations go to the kernel in bf16: halves HBM->VMEM input traffic; the
    # MXU operands are bf16 anyway (f32 accumulation).
    x1 = jnp.transpose(x1_nchw, (0, 2, 3, 1)).astype(jnp.bfloat16)       # (N,H,W,Cin)
    # space-to-depth of x2: (N,C2,2H,2W) -> (N,H,W,4*C2), index (2p+q)*C2 + c
    x2d = x2_nchw.reshape(N, C2, H, 2, W, 2)
    x2d = jnp.transpose(x2d, (0, 2, 4, 3, 5, 1)).reshape(N, H, W, 4 * C2)
    x2d = x2d.astype(jnp.bfloat16)

    # --- weight re-packing to the phase domain (tiny, trace-time) -----------
    wup = phase_upconv_weight(params["wt"]).astype(jnp.bfloat16)        # (4Cin,4Cin)
    bup = jnp.tile(params["bt"], 4).reshape(1, 4 * Cin).astype(jnp.float32)
    w1m = phase_conv3x3_weight(
        params["w1"], [(0, C2, 0), (C2, Cin, 4 * C2)]).astype(jnp.bfloat16)
    b1d = jnp.tile(params["b1"], 4).reshape(1, 4 * Cout).astype(jnp.float32)
    w2m = phase_conv3x3_weight(params["w2"], [(0, Cout, 0)]).astype(jnp.bfloat16)
    b2d = jnp.tile(params["b2"], 4).reshape(1, 4 * Cout).astype(jnp.float32)

    kernel = functools.partial(_upblock_kernel, H=H, W=W)
    # TODO(synk): for production H/W add a row-block grid axis (2-row halo),
    # sized to the chip's scoped VMEM (v7x: 64 MiB physical) and raise
    # vmem_limit_bytes; at these shapes one image per grid step fits easily.
    out_d = pl.pallas_call(
        kernel,
        out_shape=jax.ShapeDtypeStruct((N, H, W, 4 * Cout), jnp.float32),
        grid=(N,),
        in_specs=[
            pl.BlockSpec((1, H, W, Cin), lambda n: (n, 0, 0, 0)),
            pl.BlockSpec((1, H, W, 4 * C2), lambda n: (n, 0, 0, 0)),
            pl.BlockSpec((4 * Cin, 4 * Cin), lambda n: (0, 0)),
            pl.BlockSpec((1, 4 * Cin), lambda n: (0, 0)),
            pl.BlockSpec((36 * CR, 4 * Cout), lambda n: (0, 0)),
            pl.BlockSpec((1, 4 * Cout), lambda n: (0, 0)),
            pl.BlockSpec((36 * Cout, 4 * Cout), lambda n: (0, 0)),
            pl.BlockSpec((1, 4 * Cout), lambda n: (0, 0)),
        ],
        out_specs=pl.BlockSpec((1, H, W, 4 * Cout), lambda n: (n, 0, 0, 0)),
        compiler_params=pltpu.CompilerParams(dimension_semantics=("parallel",)),
    )(x1, x2d, wup, bup, w1m, b1d, w2m, b2d)

    # depth-to-space + NHWC->NCHW as one fused XLA reshuffle
    out = out_d.reshape(N, H, W, 2, 2, Cout)
    out = jnp.transpose(out, (0, 5, 1, 3, 2, 4)).reshape(N, Cout, 2 * H, 2 * W)
    return out


# ----------------------------------------------------------------------------
# Independent pure-XLA reference (dilated-conv identity, f32, highest precision).
# ----------------------------------------------------------------------------
def upblock_reference(params, x1_nchw, x2_nchw):
    hp = jax.lax.Precision.HIGHEST
    x1 = jnp.transpose(x1_nchw, (0, 2, 3, 1))
    x2 = jnp.transpose(x2_nchw, (0, 2, 3, 1))
    wt = params["wt"]                                           # (in, out, kh, kw)
    w_hwio = jnp.transpose(wt[:, :, ::-1, ::-1], (2, 3, 0, 1))  # flipped, (kh,kw,in,out)
    up = jax.lax.conv_general_dilated(
        x1, w_hwio, window_strides=(1, 1), padding=((1, 2), (1, 2)),
        lhs_dilation=(2, 2), dimension_numbers=("NHWC", "HWIO", "NHWC"),
        precision=hp)
    up = up + params["bt"].reshape(1, 1, 1, -1)
    x = jnp.concatenate([x2, up], axis=-1)

    def cr(x, w, b):
        y = jax.lax.conv_general_dilated(
            x, jnp.transpose(w, (2, 3, 1, 0)), (1, 1), ((1, 1), (1, 1)),
            dimension_numbers=("NHWC", "HWIO", "NHWC"), precision=hp)
        y = y + b.reshape(1, 1, 1, -1)
        return jnp.where(y >= 0, y, 0.2 * y)

    x = cr(x, params["w1"], params["b1"])
    x = cr(x, params["w2"], params["b2"])
    return jnp.transpose(x, (0, 3, 1, 2))


# ----------------------------------------------------------------------------
# Deterministic parameter init (PyTorch-style uniform, synthetic).
# ----------------------------------------------------------------------------
def init_params(key, in_ch, CR_ch, out_ch):
    ks = jax.random.split(key, 6)

    def u(k, shape, fan_in):
        bound = 1.0 / jnp.sqrt(float(fan_in))
        return jax.random.uniform(k, shape, jnp.float32, -bound, bound)

    return dict(
        wt=u(ks[0], (in_ch, in_ch, 3, 3), in_ch * 9),     # ConvTranspose2d weight
        bt=u(ks[1], (in_ch,), in_ch * 9),
        w1=u(ks[2], (out_ch, CR_ch, 3, 3), CR_ch * 9),    # CRblock conv1
        b1=u(ks[3], (out_ch,), CR_ch * 9),
        w2=u(ks[4], (out_ch, out_ch, 3, 3), out_ch * 9),  # CRblock conv2
        b2=u(ks[5], (out_ch,), out_ch * 9),
    )


if __name__ == "__main__":
    in_ch, CR_ch, out_ch = 4, 8, 8      # CR_ch = in_ch + channels(x2)
    N, H, W = 2, 8, 8

    key = jax.random.PRNGKey(0)
    kp, k1, k2 = jax.random.split(key, 3)
    params = init_params(kp, in_ch, CR_ch, out_ch)

    x1 = jax.random.normal(k1, (N, in_ch, H, W), jnp.float32)            # low-res
    x2 = jax.random.normal(k2, (N, CR_ch - in_ch, 2 * H, 2 * W), jnp.float32)

    fwd = jax.jit(upblock_forward)
    out = fwd(params, x1, x2)
    out = jax.block_until_ready(out)

    ref = upblock_reference(params, x1, x2)
    assert out.shape == (N, out_ch, 2 * H, 2 * W), out.shape
    max_err = float(jnp.max(jnp.abs(out - ref)))
    rel_err = float(jnp.linalg.norm(out - ref) / (jnp.linalg.norm(ref) + 1e-12))
    # bf16 matmul operands / activations with f32 accumulation -> expect <~1% error.
    assert max_err < 1e-1 and rel_err < 2e-2, (max_err, rel_err)

    print("KERNEL_OK")
</pallas_src>

<mosaic_0001>
module attributes {stable_mosaic.version = 11 : i64} {
  func.func @_upblock_kernel(%arg0: i32, %arg1: memref<1x8x8x4xbf16, #tpu.memory_space<vmem>>, %arg2: memref<1x8x8x16xbf16, #tpu.memory_space<vmem>>, %arg3: memref<16x16xbf16, #tpu.memory_space<vmem>>, %arg4: memref<1x16xf32, #tpu.memory_space<vmem>>, %arg5: memref<288x32xbf16, #tpu.memory_space<vmem>>, %arg6: memref<1x32xf32, #tpu.memory_space<vmem>>, %arg7: memref<288x32xbf16, #tpu.memory_space<vmem>>, %arg8: memref<1x32xf32, #tpu.memory_space<vmem>>, %arg9: memref<1x8x8x32xf32, #tpu.memory_space<vmem>>) attributes {dimension_semantics = [#tpu.dimension_semantics<parallel>], iteration_bounds = array<i64: 2>, scalar_prefetch = 0 : i64, scratch_operands = 0 : i64, tpu.core_type = #tpu.core_type<tc>, window_params = [{transform_indices = @transform_0, window_bounds = array<i64: 1, 8, 8, 4>}, {transform_indices = @transform_1, window_bounds = array<i64: 1, 8, 8, 16>}, {pipeline_mode = #tpu.pipeline_mode<synchronous>, transform_indices = @transform_2, window_bounds = array<i64: 16, 16>}, {pipeline_mode = #tpu.pipeline_mode<synchronous>, transform_indices = @transform_3, window_bounds = array<i64: 1, 16>}, {pipeline_mode = #tpu.pipeline_mode<synchronous>, transform_indices = @transform_4, window_bounds = array<i64: 288, 32>}, {pipeline_mode = #tpu.pipeline_mode<synchronous>, transform_indices = @transform_5, window_bounds = array<i64: 1, 32>}, {pipeline_mode = #tpu.pipeline_mode<synchronous>, transform_indices = @transform_6, window_bounds = array<i64: 288, 32>}, {pipeline_mode = #tpu.pipeline_mode<synchronous>, transform_indices = @transform_7, window_bounds = array<i64: 1, 32>}, {transform_indices = @transform_8, window_bounds = array<i64: 1, 8, 8, 32>}]} {
    %c0 = arith.constant 0 : index
    %c0_0 = arith.constant 0 : index
    %c0_1 = arith.constant 0 : index
    %c0_2 = arith.constant 0 : index
    %0 = vector.load %arg1[%c0, %c0_0, %c0_1, %c0_2] : memref<1x8x8x4xbf16, #tpu.memory_space<vmem>>, vector<1x8x8x4xbf16>
    %1 = vector.shape_cast %0 : vector<1x8x8x4xbf16> to vector<8x8x4xbf16>
    %c0_3 = arith.constant 0 : index
    %c0_4 = arith.constant 0 : index
    %c0_5 = arith.constant 0 : index
    %c0_6 = arith.constant 0 : index
    %2 = vector.load %arg2[%c0_3, %c0_4, %c0_5, %c0_6] : memref<1x8x8x16xbf16, #tpu.memory_space<vmem>>, vector<1x8x8x16xbf16>
    %3 = vector.shape_cast %2 : vector<1x8x8x16xbf16> to vector<8x8x16xbf16>
    %cst = arith.constant 0.000000e+00 : bf16
    %4 = vector.broadcast %cst : bf16 to vector<8x1x4xbf16>
    %5 = tpu.concatenate %1, %4 in 1 : vector<8x8x4xbf16>, vector<8x1x4xbf16> -> vector<8x9x4xbf16>
    %cst_7 = arith.constant 0.000000e+00 : bf16
    %6 = vector.broadcast %cst_7 : bf16 to vector<1x9x4xbf16>
    %7 = tpu.concatenate %5, %6 in 0 : vector<8x9x4xbf16>, vector<1x9x4xbf16> -> vector<9x9x4xbf16>
    %8 = vector.extract_strided_slice %7 {offsets = [0, 0, 0], sizes = [8, 8, 4], strides = [1, 1, 1]} : vector<9x9x4xbf16> to vector<8x8x4xbf16>
    %9 = vector.extract_strided_slice %7 {offsets = [0, 1, 0], sizes = [8, 8, 4], strides = [1, 1, 1]} : vector<9x9x4xbf16> to vector<8x8x4xbf16>
    %10 = vector.extract_strided_slice %7 {offsets = [1, 0, 0], sizes = [8, 8, 4], strides = [1, 1, 1]} : vector<9x9x4xbf16> to vector<8x8x4xbf16>
    %11 = vector.extract_strided_slice %7 {offsets = [1, 1, 0], sizes = [8, 8, 4], strides = [1, 1, 1]} : vector<9x9x4xbf16> to vector<8x8x4xbf16>
    %12 = tpu.concatenate %8, %9, %10, %11 in 2 : vector<8x8x4xbf16>, vector<8x8x4xbf16>, vector<8x8x4xbf16>, vector<8x8x4xbf16> -> vector<8x8x16xbf16>
    %13 = vector.shape_cast %12 : vector<8x8x16xbf16> to vector<64x16xbf16>
    %c0_8 = arith.constant 0 : index
    %c0_9 = arith.constant 0 : index
    %14 = vector.load %arg3[%c0_8, %c0_9] : memref<16x16xbf16, #tpu.memory_space<vmem>>, vector<16x16xbf16>
    %cst_10 = arith.constant dense<0.000000e+00> : vector<64x16xf32>
    %15 = tpu.matmul %13, %14, %cst_10 {dimension_numbers = #tpu.dot_dimension_numbers<[1], [0], [0], [1], [0, 0, 1, 1], [], []>} : vector<64x16xbf16>, vector<16x16xbf16>, vector<64x16xf32> -> vector<64x16xf32>
    %c0_11 = arith.constant 0 : index
    %c0_12 = arith.constant 0 : index
    %16 = vector.load %arg4[%c0_11, %c0_12] : memref<1x16xf32, #tpu.memory_space<vmem>>, vector<1x16xf32>
    %17 = vector.broadcast %16 : vector<1x16xf32> to vector<64x16xf32>
    %18 = arith.addf %15, %17 : vector<64x16xf32>
    %19 = vector.shape_cast %18 : vector<64x16xf32> to vector<8x8x16xf32>
    %20 = arith.truncf %19 : vector<8x8x16xf32> to vector<8x8x16xbf16>
    %21 = tpu.concatenate %3, %20 in 2 : vector<8x8x16xbf16>, vector<8x8x16xbf16> -> vector<8x8x32xbf16>
    %cst_13 = arith.constant 0.000000e+00 : bf16
    %22 = vector.broadcast %cst_13 : bf16 to vector<8x1x32xbf16>
    %cst_14 = arith.constant 0.000000e+00 : bf16
    %23 = vector.broadcast %cst_14 : bf16 to vector<8x1x32xbf16>
    %24 = tpu.concatenate %22, %21, %23 in 1 : vector<8x1x32xbf16>, vector<8x8x32xbf16>, vector<8x1x32xbf16> -> vector<8x10x32xbf16>
    %cst_15 = arith.constant 0.000000e+00 : bf16
    %25 = vector.broadcast %cst_15 : bf16 to vector<1x10x32xbf16>
    %cst_16 = arith.constant 0.000000e+00 : bf16
    %26 = vector.broadcast %cst_16 : bf16 to vector<1x10x32xbf16>
    %27 = tpu.concatenate %25, %24, %26 in 0 : vector<1x10x32xbf16>, vector<8x10x32xbf16>, vector<1x10x32xbf16> -> vector<10x10x32xbf16>
    %28 = vector.extract_strided_slice %27 {offsets = [0, 0, 0], sizes = [8, 8, 32], strides = [1, 1, 1]} : vector<10x10x32xbf16> to vector<8x8x32xbf16>
    %29 = vector.extract_strided_slice %27 {offsets = [0, 1, 0], sizes = [8, 8, 32], strides = [1, 1, 1]} : vector<10x10x32xbf16> to vector<8x8x32xbf16>
    %30 = vector.extract_strided_slice %27 {offsets = [0, 2, 0], sizes = [8, 8, 32], strides = [1, 1, 1]} : vector<10x10x32xbf16> to vector<8x8x32xbf16>
    %31 = vector.extract_strided_slice %27 {offsets = [1, 0, 0], sizes = [8, 8, 32], strides = [1, 1, 1]} : vector<10x10x32xbf16> to vector<8x8x32xbf16>
    %32 = vector.extract_strided_slice %27 {offsets = [1, 1, 0], sizes = [8, 8, 32], strides = [1, 1, 1]} : vector<10x10x32xbf16> to vector<8x8x32xbf16>
    %33 = vector.extract_strided_slice %27 {offsets = [1, 2, 0], sizes = [8, 8, 32], strides = [1, 1, 1]} : vector<10x10x32xbf16> to vector<8x8x32xbf16>
    %34 = vector.extract_strided_slice %27 {offsets = [2, 0, 0], sizes = [8, 8, 32], strides = [1, 1, 1]} : vector<10x10x32xbf16> to vector<8x8x32xbf16>
    %35 = vector.extract_strided_slice %27 {offsets = [2, 1, 0], sizes = [8, 8, 32], strides = [1, 1, 1]} : vector<10x10x32xbf16> to vector<8x8x32xbf16>
    %36 = vector.extract_strided_slice %27 {offsets = [2, 2, 0], sizes = [8, 8, 32], strides = [1, 1, 1]} : vector<10x10x32xbf16> to vector<8x8x32xbf16>
    %37 = tpu.concatenate %28, %29, %30, %31, %32, %33, %34, %35, %36 in 2 : vector<8x8x32xbf16>, vector<8x8x32xbf16>, vector<8x8x32xbf16>, vector<8x8x32xbf16>, vector<8x8x32xbf16>, vector<8x8x32xbf16>, vector<8x8x32xbf16>, vector<8x8x32xbf16>, vector<8x8x32xbf16> -> vector<8x8x288xbf16>
    %38 = vector.shape_cast %37 : vector<8x8x288xbf16> to vector<64x288xbf16>
    %c0_17 = arith.constant 0 : index
    %c0_18 = arith.constant 0 : index
    %39 = vector.load %arg5[%c0_17, %c0_18] : memref<288x32xbf16, #tpu.memory_space<vmem>>, vector<288x32xbf16>
    %cst_19 = arith.constant dense<0.000000e+00> : vector<64x32xf32>
    %40 = tpu.matmul %38, %39, %cst_19 {dimension_numbers = #tpu.dot_dimension_numbers<[1], [0], [0], [1], [0, 0, 1, 1], [], []>} : vector<64x288xbf16>, vector<288x32xbf16>, vector<64x32xf32> -> vector<64x32xf32>
    %c0_20 = arith.constant 0 : index
    %c0_21 = arith.constant 0 : index
    %41 = vector.load %arg6[%c0_20, %c0_21] : memref<1x32xf32, #tpu.memory_space<vmem>>, vector<1x32xf32>
    %42 = vector.broadcast %41 : vector<1x32xf32> to vector<64x32xf32>
    %43 = arith.addf %40, %42 : vector<64x32xf32>
    %cst_22 = arith.constant 0.000000e+00 : f32
    %44 = vector.broadcast %cst_22 : f32 to vector<64x32xf32>
    %45 = arith.cmpf oge, %43, %44 : vector<64x32xf32>
    %cst_23 = arith.constant 2.000000e-01 : f32
    %46 = vector.broadcast %cst_23 : f32 to vector<64x32xf32>
    %47 = arith.mulf %46, %43 : vector<64x32xf32>
    %48 = arith.select %45, %43, %47 : vector<64x32xi1>, vector<64x32xf32>
    %49 = vector.shape_cast %48 : vector<64x32xf32> to vector<8x8x32xf32>
    %50 = arith.truncf %49 : vector<8x8x32xf32> to vector<8x8x32xbf16>
    %cst_24 = arith.constant 0.000000e+00 : bf16
    %51 = vector.broadcast %cst_24 : bf16 to vector<8x1x32xbf16>
    %cst_25 = arith.constant 0.000000e+00 : bf16
    %52 = vector.broadcast %cst_25 : bf16 to vector<8x1x32xbf16>
    %53 = tpu.concatenate %51, %50, %52 in 1 : vector<8x1x32xbf16>, vector<8x8x32xbf16>, vector<8x1x32xbf16> -> vector<8x10x32xbf16>
    %cst_26 = arith.constant 0.000000e+00 : bf16
    %54 = vector.broadcast %cst_26 : bf16 to vector<1x10x32xbf16>
    %cst_27 = arith.constant 0.000000e+00 : bf16
    %55 = vector.broadcast %cst_27 : bf16 to vector<1x10x32xbf16>
    %56 = tpu.concatenate %54, %53, %55 in 0 : vector<1x10x32xbf16>, vector<8x10x32xbf16>, vector<1x10x32xbf16> -> vector<10x10x32xbf16>
    %57 = vector.extract_strided_slice %56 {offsets = [0, 0, 0], sizes = [8, 8, 32], strides = [1, 1, 1]} : vector<10x10x32xbf16> to vector<8x8x32xbf16>
    %58 = vector.extract_strided_slice %56 {offsets = [0, 1, 0], sizes = [8, 8, 32], strides = [1, 1, 1]} : vector<10x10x32xbf16> to vector<8x8x32xbf16>
    %59 = vector.extract_strided_slice %56 {offsets = [0, 2, 0], sizes = [8, 8, 32], strides = [1, 1, 1]} : vector<10x10x32xbf16> to vector<8x8x32xbf16>
    %60 = vector.extract_strided_slice %56 {offsets = [1, 0, 0], sizes = [8, 8, 32], strides = [1, 1, 1]} : vector<10x10x32xbf16> to vector<8x8x32xbf16>
    %61 = vector.extract_strided_slice %56 {offsets = [1, 1, 0], sizes = [8, 8, 32], strides = [1, 1, 1]} : vector<10x10x32xbf16> to vector<8x8x32xbf16>
    %62 = vector.extract_strided_slice %56 {offsets = [1, 2, 0], sizes = [8, 8, 32], strides = [1, 1, 1]} : vector<10x10x32xbf16> to vector<8x8x32xbf16>
    %63 = vector.extract_strided_slice %56 {offsets = [2, 0, 0], sizes = [8, 8, 32], strides = [1, 1, 1]} : vector<10x10x32xbf16> to vector<8x8x32xbf16>
    %64 = vector.extract_strided_slice %56 {offsets = [2, 1, 0], sizes = [8, 8, 32], strides = [1, 1, 1]} : vector<10x10x32xbf16> to vector<8x8x32xbf16>
    %65 = vector.extract_strided_slice %56 {offsets = [2, 2, 0], sizes = [8, 8, 32], strides = [1, 1, 1]} : vector<10x10x32xbf16> to vector<8x8x32xbf16>
    %66 = tpu.concatenate %57, %58, %59, %60, %61, %62, %63, %64, %65 in 2 : vector<8x8x32xbf16>, vector<8x8x32xbf16>, vector<8x8x32xbf16>, vector<8x8x32xbf16>, vector<8x8x32xbf16>, vector<8x8x32xbf16>, vector<8x8x32xbf16>, vector<8x8x32xbf16>, vector<8x8x32xbf16> -> vector<8x8x288xbf16>
    %67 = vector.shape_cast %66 : vector<8x8x288xbf16> to vector<64x288xbf16>
    %c0_28 = arith.constant 0 : index
    %c0_29 = arith.constant 0 : index
    %68 = vector.load %arg7[%c0_28, %c0_29] : memref<288x32xbf16, #tpu.memory_space<vmem>>, vector<288x32xbf16>
    %cst_30 = arith.constant dense<0.000000e+00> : vector<64x32xf32>
    %69 = tpu.matmul %67, %68, %cst_30 {dimension_numbers = #tpu.dot_dimension_numbers<[1], [0], [0], [1], [0, 0, 1, 1], [], []>} : vector<64x288xbf16>, vector<288x32xbf16>, vector<64x32xf32> -> vector<64x32xf32>
    %c0_31 = arith.constant 0 : index
    %c0_32 = arith.constant 0 : index
    %70 = vector.load %arg8[%c0_31, %c0_32] : memref<1x32xf32, #tpu.memory_space<vmem>>, vector<1x32xf32>
    %71 = vector.broadcast %70 : vector<1x32xf32> to vector<64x32xf32>
    %72 = arith.addf %69, %71 : vector<64x32xf32>
    %cst_33 = arith.constant 0.000000e+00 : f32
    %73 = vector.broadcast %cst_33 : f32 to vector<64x32xf32>
    %74 = arith.cmpf oge, %72, %73 : vector<64x32xf32>
    %cst_34 = arith.constant 2.000000e-01 : f32
    %75 = vector.broadcast %cst_34 : f32 to vector<64x32xf32>
    %76 = arith.mulf %75, %72 : vector<64x32xf32>
    %77 = arith.select %74, %72, %76 : vector<64x32xi1>, vector<64x32xf32>
    %78 = vector.shape_cast %77 : vector<64x32xf32> to vector<8x8x32xf32>
    %c0_35 = arith.constant 0 : index
    %c0_36 = arith.constant 0 : index
    %c0_37 = arith.constant 0 : index
    %c0_38 = arith.constant 0 : index
    %79 = vector.load %arg9[%c0_35, %c0_36, %c0_37, %c0_38] : memref<1x8x8x32xf32, #tpu.memory_space<vmem>>, vector<1x8x8x32xf32>
    %80 = vector.shape_cast %79 : vector<1x8x8x32xf32> to vector<8x8x32xf32>
    %81 = vector.shape_cast %78 : vector<8x8x32xf32> to vector<1x8x8x32xf32>
    tpu.vector_store %arg9[%c0_35, %c0_36, %c0_37, %c0_38], %81 {strides = array<i32>} : memref<1x8x8x32xf32, #tpu.memory_space<vmem>>, vector<1x8x8x32xf32>,
    return
  }
  func.func @transform_0(%arg0: i32) -> (i32, i32, i32, i32) {
    %c0_i32 = arith.constant 0 : i32
    %c0_i32_0 = arith.constant 0 : i32
    %c0_i32_1 = arith.constant 0 : i32
    %c0_i32_2 = arith.constant 0 : i32
    return %arg0, %c0_i32, %c0_i32_0, %c0_i32_1 : i32, i32, i32, i32
  }
  func.func @transform_1(%arg0: i32) -> (i32, i32, i32, i32) {
    %c0_i32 = arith.constant 0 : i32
    %c0_i32_0 = arith.constant 0 : i32
    %c0_i32_1 = arith.constant 0 : i32
    %c0_i32_2 = arith.constant 0 : i32
    return %arg0, %c0_i32, %c0_i32_0, %c0_i32_1 : i32, i32, i32, i32
  }
  func.func @transform_2(%arg0: i32) -> (i32, i32) {
    %c0_i32 = arith.constant 0 : i32
    %c0_i32_0 = arith.constant 0 : i32
    %c0_i32_1 = arith.constant 0 : i32
    return %c0_i32, %c0_i32_0 : i32, i32
  }
  func.func @transform_3(%arg0: i32) -> (i32, i32) {
    %c0_i32 = arith.constant 0 : i32
    %c0_i32_0 = arith.constant 0 : i32
    %c0_i32_1 = arith.constant 0 : i32
    return %c0_i32, %c0_i32_0 : i32, i32
  }
  func.func @transform_4(%arg0: i32) -> (i32, i32) {
    %c0_i32 = arith.constant 0 : i32
    %c0_i32_0 = arith.constant 0 : i32
    %c0_i32_1 = arith.constant 0 : i32
    return %c0_i32, %c0_i32_0 : i32, i32
  }
  func.func @transform_5(%arg0: i32) -> (i32, i32) {
    %c0_i32 = arith.constant 0 : i32
    %c0_i32_0 = arith.constant 0 : i32
    %c0_i32_1 = arith.constant 0 : i32
    return %c0_i32, %c0_i32_0 : i32, i32
  }
  func.func @transform_6(%arg0: i32) -> (i32, i32) {
    %c0_i32 = arith.constant 0 : i32
    %c0_i32_0 = arith.constant 0 : i32
    %c0_i32_1 = arith.constant 0 : i32
    return %c0_i32, %c0_i32_0 : i32, i32
  }
  func.func @transform_7(%arg0: i32) -> (i32, i32) {
    %c0_i32 = arith.constant 0 : i32
    %c0_i32_0 = arith.constant 0 : i32
    %c0_i32_1 = arith.constant 0 : i32
    return %c0_i32, %c0_i32_0 : i32, i32
  }
  func.func @transform_8(%arg0: i32) -> (i32, i32, i32, i32) {
    %c0_i32 = arith.constant 0 : i32
    %c0_i32_0 = arith.constant 0 : i32
    %c0_i32_1 = arith.constant 0 : i32
    %c0_i32_2 = arith.constant 0 : i32
    return %arg0, %c0_i32, %c0_i32_0, %c0_i32_1 : i32, i32, i32, i32
  }
}

</mosaic_0001>

<bundles_post_ra>
// kernel: tile.23
= control target key start
LH: loop header
LB: loop body
LE: loop exit
PB: predicated region body
PF: predicated region fallthrough
CT: control target
= control target key end

     0   :  { %2 = vsyncpa [#allocation1], 0  ;;  %s44_s6 = smov [#allocation0]   ;;  %s70_s0 = inlined_call_operand.hbm [shape: f32[8], index: 0, kind: input, shape index: {}]   ;;  %s71_s1 = inlined_call_operand.vmem [shape: f32[4,8], index: 1, kind: output, shape index: {}]  }
   0x1   :  { %s9_s7 = sshll.u32 %s44_s6, 4  ;;  %s20_s10 = scalar_lea.hbm %s70_s0, 16  ;;  %s10_s7 = int_to_ptr.vmem [resolvable:$true] %s9_s7 }
   0x2   :  { %p21_p0 = scmp.ne.s32.totalorder %s70_s0, %s20_s10  ;;  %p24_p1 = scmp.lt.u32.totalorder %s20_s10, %s70_s0 }
   0x4   :  { %p26_p2 = pnand %p24_p1, %p21_p0 }
   0x6   :  { %29 = shalt.err (!%p26_p2)
}
   0x7   :  { %s30_s15 = scalar_lea.vmem %s10_s7, 16  ;;  %s34_s16 = scalar_lea.vmem %s10_s7, 32 }
   0x8   :  { %p31_p3 = scmp.ne.s32.totalorder %s10_s7, %s30_s15  ;;  %p35_p4 = scmp.lt.s32.totalorder %s10_s7, %s10_s7 }
   0x9   :  { %p36_p5 = scmp.lt.s32.totalorder %s34_s16, %s30_s15 }
   0xb   :  { %p37_p6 = por %p36_p5, %p35_p4 }
   0xd   :  { %p38_p7 = pnand %p37_p6, %p31_p3 }
   0xf   :  { %41 = shalt.err (!%p38_p7)
}
  0x10   :  { %12 = dma.hbm_to_vmem [thread:$0]  %s70_s0, 16, %s10_s7, [#allocation1]  }
  0x11   :  { %42 = dma.done.wait [#allocation1], 16  }
  0x12   :  { %43 = vsyncadd [#allocation1], 4294967280  ;;  %v16_v0 = vld [vmem:[#allocation0] ss:$0 sm:$0xff] }
  0x13   :  { %17 = vst [vmem:[%s71_s1] sm:$0xf] %v16_v0 }
  0x14   :  { %18 = vsyncpa [#allocation1], 1 }

// kernel: tile.18
= control target key start
LH: loop header
LB: loop body
LE: loop exit
PB: predicated region body
PF: predicated region fallthrough
CT: control target
= control target key end

     0   :  { %s22_s0 = inlined_call_operand.vmem [shape: f32[4], index: 0, kind: input, shape index: {}]   ;;  %s23_s1 = inlined_call_operand.vmem [shape: f32[4,4], index: 1, kind: output, shape index: {}]  }
   0x1   :  { %v4_v0 = vld [vmem:[%s22_s0] ss:$0 sm:$0xff] }
   0x2   :  { %5 = vst [vmem:[%s23_s1] sm:$0xf] %v4_v0 }

// kernel: tile.24
= control target key start
LH: loop header
LB: loop body
LE: loop exit
PB: predicated region body
PF: predicated region fallthrough
CT: control target
= control target key end

     0   :  { %vm7_vm0 = vcmask 64512   ;;  %s37_s8 = smov 8   ;;  %s38_s9 = smov 16   ;;  %vm13_vm1 = vcmask 261312   ;;  %vm19_vm2 = vcmask 195712   ;;  %vm25_vm3 = vcmask 130112   ;;  %s55_s0 = inlined_call_operand.vmem [shape: f32[4,8], index: 0, kind: input, shape index: {}]   ;;  %s56_s1 = inlined_call_operand.vmem [shape: f32[1,32], index: 1, kind: output, shape index: {}]  }
   0x1   :  { %v4_v0 = vld [vmem:[%s55_s0] sm:$0xf]  ;;  %s36_s0 = smov 24  }
   0x2   :  { %5 = vst [vmem:[#allocation1] sm:$0xf] %v4_v0 }
   0x9   :  { %v10_v1 = vld [vmem:[#allocation1 + $0x3] sm:$0x1]   ;;  %v22_v2 = vld [vmem:[#allocation1 + $0x1] sm:$0x1]   ;;  %v6_v3 = vld [vmem:[#allocation1] sm:$0x1]  }
   0xa   :  { %11 = vrot.lane.b32.xlu0 %v10_v1, %s36_s0  ;;  %23 = vrot.lane.b32.xlu1 %v22_v2, %s37_s8  ;;  %v16_v4 = vld [vmem:[#allocation1 + $0x2] sm:$0x1]   ;;  %8 = vst.msk [vmem:[#allocation0] sm:$0x1] %vm7_vm0, %v6_v3  }
   0xe   :  { %17 = vrot.lane.b32.xlu0 %v16_v4, %s38_s9 }
  0x7c   :  { %v12_v5 = vpop.permute.xlu0 %11   ;;  %v24_v6 = vpop.permute.xlu1 %23  }
  0x7d   :  { %14 = vst.msk [vmem:[#allocation0] sm:$0x1] %vm13_vm1, %v12_v5  }
  0x80   :  { %v18_v7 = vpop.permute.xlu0 %17  }
  0x81   :  { %20 = vst.msk [vmem:[#allocation0] sm:$0x1] %vm19_vm2, %v18_v7  }
  0x82   :  { %26 = vst.msk [vmem:[#allocation0] sm:$0x1] %vm25_vm3, %v24_v6  }
  0x89   :  { %v30_v8 = vld [vmem:[#allocation0] sm:$0x1] }
  0x8a   :  { %32 = vst [vmem:[%s56_s1] sm:$0x1] %v30_v8 }

// kernel: tile.19
= control target key start
LH: loop header
LB: loop body
LE: loop exit
PB: predicated region body
PF: predicated region fallthrough
CT: control target
= control target key end

     0   :  { %vm7_vm0 = vcmask 31744   ;;  %s37_s8 = smov 4   ;;  %s38_s9 = smov 8   ;;  %vm13_vm1 = vcmask 130144   ;;  %vm19_vm2 = vcmask 97344   ;;  %vm25_vm3 = vcmask 64544   ;;  %s55_s0 = inlined_call_operand.vmem [shape: f32[4,4], index: 0, kind: input, shape index: {}]   ;;  %s56_s1 = inlined_call_operand.vmem [shape: f32[1,16], index: 1, kind: output, shape index: {}]  }
   0x1   :  { %v4_v0 = vld [vmem:[%s55_s0] sm:$0xf]  ;;  %s36_s0 = smov 12  }
   0x2   :  { %5 = vst [vmem:[#allocation1] sm:$0xf] %v4_v0 }
   0x9   :  { %v10_v1 = vld [vmem:[#allocation1 + $0x3] sm:$0x1]   ;;  %v22_v2 = vld [vmem:[#allocation1 + $0x1] sm:$0x1]   ;;  %v6_v3 = vld [vmem:[#allocation1] sm:$0x1]  }
   0xa   :  { %11 = vrot.lane.b32.xlu0 %v10_v1, %s36_s0  ;;  %23 = vrot.lane.b32.xlu1 %v22_v2, %s37_s8  ;;  %v16_v4 = vld [vmem:[#allocation1 + $0x2] sm:$0x1]   ;;  %8 = vst.msk [vmem:[#allocation0] sm:$0x1] %vm7_vm0, %v6_v3  }
   0xe   :  { %17 = vrot.lane.b32.xlu0 %v16_v4, %s38_s9 }
  0x7c   :  { %v12_v5 = vpop.permute.xlu0 %11   ;;  %v24_v6 = vpop.permute.xlu1 %23  }
  0x7d   :  { %14 = vst.msk [vmem:[#allocation0] sm:$0x1] %vm13_vm1, %v12_v5  }
  0x80   :  { %v18_v7 = vpop.permute.xlu0 %17  }
  0x81   :  { %20 = vst.msk [vmem:[#allocation0] sm:$0x1] %vm19_vm2, %v18_v7  }
  0x82   :  { %26 = vst.msk [vmem:[#allocation0] sm:$0x1] %vm25_vm3, %v24_v6  }
  0x89   :  { %v30_v8 = vld [vmem:[#allocation0] sm:$0x1] }
  0x8a   :  { %32 = vst [vmem:[%s56_s1] sm:$0x1] %v30_v8 }

// kernel: upblock_forward.1
= control target key start
LH: loop header
LB: loop body
LE: loop exit
PB: predicated region body
PF: predicated region fallthrough
CT: control target
= control target key end

     0   :  { %s2560_s27 = smov 0   ;;  %s3380_s0 = inlined_call_operand.vmem [shape: bf16[2,8,8,4], index: 0, kind: input, shape index: {}]   ;;  %s3381_s1 = inlined_call_operand.vmem [shape: bf16[2,8,8,16], index: 1, kind: input, shape index: {}]   ;;  %s3382_s2 = inlined_call_operand.vmem [shape: bf16[16,16], index: 2, kind: input, shape index: {}]   ;;  %s3383_s3 = inlined_call_operand.vmem [shape: f32[1,16], index: 3, kind: input, shape index: {}]   ;;  %s3384_s4 = inlined_call_operand.vmem [shape: bf16[288,32], index: 4, kind: input, shape index: {}]   ;;  %s3385_s5 = inlined_call_operand.vmem [shape: f32[1,32], index: 5, kind: input, shape index: {}]   ;;  %s3386_s6 = inlined_call_operand.vmem [shape: bf16[288,32], index: 6, kind: input, shape index: {}]   ;;  %s3387_s7 = inlined_call_operand.vmem [shape: f32[1,32], index: 7, kind: input, shape index: {}]   ;;  %s3388_s8 = inlined_call_operand.vmem [shape: f32[2,8,8,32], index: 8, kind: output, shape index: {}]  }
   0x1 LB: > { %s2219_s28 = sadd.s32 4294967295, %s2505_s27   ;;  %p2223_p0 = scmp.ge.s32.totalorder %s2505_s27, 1  ;;  %s2505_s27 = sphi %s2560_s27, %s18_s27  }
   0x2   : > { %p272_p1 = scmp.lt.s32.totalorder %s2505_s27, 3 }
   0x4   : > { %p273_p2 = pnand %p2223_p0, %p272_p1 }
   0x5   : > { %p311_p3 = scmp.lt.s32.totalorder (!%p273_p2), %s2219_s28, 1  ;;  %vm343_vm0 = vcmask (!%p273_p2), 1043456   ;;  %s2507_s11 = smov (!%p273_p2), 8   ;;  %v2462_v26 = vld [vmem:[%s3382_s2] sm:$0xff] (!%p273_p2)   ;;  %v2510_v49 = vmov (!%p273_p2), 0   ;;  %vm471_vm1 = vcmask (!%p273_p2), 31744  }
   0x6   : > { %276 = sbr.rel (%p273_p2) target bundleno = 1332 (0x534), region = 52  ;;  %2412 = vmatprep.subr.bf16.mxu0 (!%p273_p2), %v2462_v26  ;;  %s2508_s14 = smov (!%p273_p2), 4   ;;  %v2646_v50 = vrot.slane (!%p273_p2), %v2510_v49, 1  ;;  %vm488_vm2 = vcmask (!%p273_p2), 64512   ;;  %vm505_vm3 = vcmask (!%p273_p2), 97280   ;;  %vm557_vm4 = vcmask (!%p273_p2), 130048  }
   0x7   : > { %2413 = vmatpush3.bf16.msra.mxu0 (!%p273_p2), %v2462_v26  ;;  %s2509_s15 = smov (!%p273_p2), 12   ;;  %s2511_s16 = smov (!%p273_p2), 32   ;;  %vm747_vm5 = vcmask (!%p273_p2), 1040384   ;;  %vm748_vm6 = vsmask.f32 (!%p273_p2), 256  ;;  %vm758_vm7 = vcmask (!%p273_p2), 1044480  }
   0x8   : > { %s2512_s19 = smov (!%p273_p2), 16   ;;  %s2513_s24 = smov (!%p273_p2), 64   ;;  %vm759_vm8 = vsmask.f32 (!%p273_p2), 4352  ;;  %vm2713_vm9 = vmand (!%p273_p2), %vm747_vm5, %vm748_vm6  ;;  %vm938_vm11 = vcmask (!%p273_p2), 261120   ;;  %vm955_vm12 = vcmask (!%p273_p2), 523264  }
   0x9   : > { %vm2718_vm10 = vmand (!%p273_p2), %vm758_vm7, %vm759_vm8  ;;  %s2514_s12 = smov (!%p273_p2), 96   ;;  %vm972_vm13 = vcmask (!%p273_p2), 785408  }
   0xd   : > { %s3394_s28 = smov (!%p311_p3, %s2219_s28), 1 }
   0xe   : > { %s2312_s29 = sshll.u32 %s3394_s28, 5 }
   0xf   : > { %s2576_s10 = scalar_lea.vmem %s3380_s0, %s2312_s29  ;;  %s2705_s30 = scalar_lea.vmem %s3381_s1, %s2312_s29 }
  0x10   : > { %v329_v0 = vld [vmem:[%s2576_s10 + $0x8] sm:$0xf]  ;;  %v328_v1 = vld [vmem:[%s2576_s10 + $0x4] sm:$0xf]  ;;  %v331_v2 = vld [vmem:[%s2576_s10 + $0x10] sm:$0xf] }
  0x11   : > { %v2582_v3 = vsel %vm343_vm0, %v329_v0, 0  ;;  %v2585_v4 = vsel %vm343_vm0, %v328_v1, 0  ;;  %v330_v5 = vld [vmem:[%s2576_s10 + $0xc] sm:$0xf]  ;;  %v327_v9 = vld [vmem:[%s2576_s10] sm:$0xf] }
  0x12   : > { %435 = vrot.lane.b32.xlu1 %v2582_v3, %s2507_s11  ;;  %433 = vrot.lane.b32.xlu0 %v2585_v4, %s2507_s11  ;;  %v2593_v6 = vsel %vm343_vm0, %v330_v5, 0  ;;  %v373_v7 = vshrl.u32 %v2582_v3, 16  ;;  %v375_v8 = vshll.u32 %v2582_v3, 16  ;;  %v2599_v10 = vsel %vm343_vm0, %v331_v2, 0  ;;  %v332_v14 = vld [vmem:[%s2576_s10 + $0x14] sm:$0xf] }
  0x13   : > { %v2602_v11 = vsel %vm343_vm0, %v327_v9, 0  ;;  %v381_v12 = vshll.u32 %v2593_v6, 16  ;;  %v369_v13 = vshll.u32 %v2585_v4, 16  ;;  %v379_v18 = vshrl.u32 %v2593_v6, 16  ;;  %v334_v27 = vld [vmem:[%s2576_s10 + $0x1c] sm:$0xf] }
  0x14   : > { %v377_v15 = vrot.slane %v375_v8, 1  ;;  %v361_v16 = vshrl.u32 %v2602_v11, 16  ;;  %v363_v17 = vshll.u32 %v2602_v11, 16  ;;  %v367_v20 = vshrl.u32 %v2585_v4, 16  ;;  %v333_v36 = vld [vmem:[%s2576_s10 + $0x18] sm:$0xf] }
  0x15   : > { %v383_v19 = vrot.slane %v381_v12, 1  ;;  %v2612_v21 = vsel %vm343_vm0, %v332_v14, 0  ;;  %v371_v24 = vrot.slane %v369_v13, 1  ;;  %v387_v25 = vshll.u32 %v2599_v10, 16 }
  0x16   : > { %439 = vrot.lane.b32.xlu1 %v2599_v10, %s2507_s11  ;;  %437 = vrot.lane.b32.xlu0 %v2593_v6, %s2507_s11  ;;  %v378_v22 = vor.u32 %v377_v15, %v373_v7  ;;  %v365_v23 = vrot.slane %v363_v17, 1  ;;  %v393_v29 = vshll.u32 %v2612_v21, 16  ;;  %v385_v30 = vshrl.u32 %v2599_v10, 16 }
  0x17   : > { %v391_v31 = vshrl.u32 %v2612_v21, 16  ;;  %v384_v32 = vor.u32 %v383_v19, %v379_v18  ;;  %v372_v33 = vor.u32 %v371_v24, %v367_v20  ;;  %v389_v34 = vrot.slane %v387_v25, 1 }
  0x18   : > { %v366_v28 = vor.u32 %v365_v23, %v361_v16  ;;  %v2627_v35 = vsel %vm343_vm0, %v334_v27, 0  ;;  %v395_v37 = vrot.slane %v393_v29, 1  ;;  %v2633_v40 = vsel %vm343_vm0, %v333_v36, 0 }
  0x19   : > { %v403_v38 = vshrl.u32 %v2627_v35, 16  ;;  %v405_v39 = vshll.u32 %v2627_v35, 16  ;;  %v390_v41 = vor.u32 %v389_v34, %v385_v30  ;;  %v399_v43 = vshll.u32 %v2633_v40, 16 }
  0x1a   : > { %413 = vrot.lane.b32.xlu1 %v378_v22, %s2508_s14  ;;  %409 = vrot.lane.b32.xlu0 %v366_v28, %s2508_s14  ;;  %v396_v44 = vor.u32 %v395_v37, %v391_v31  ;;  %v397_v45 = vshrl.u32 %v2633_v40, 16 }
  0x1b   : > { %v407_v42 = vrot.slane %v405_v39, 1  ;;  %v401_v46 = vrot.slane %v399_v43, 1  ;;  %v2230_v39 = vld [vmem:[%s3383_s3] ss:$0 sm:$0xff] }
  0x1d   : > { %v408_v47 = vor.u32 %v407_v42, %v403_v38  ;;  %v402_v48 = vor.u32 %v401_v46, %v397_v45 }
  0x1e   : > { %415 = vrot.lane.b32.xlu1 %v384_v32, %s2508_s14  ;;  %411 = vrot.lane.b32.xlu0 %v372_v33, %s2508_s14 }
  0x22   : > { %457 = vrot.lane.b32.xlu1 %v378_v22, %s2509_s15  ;;  %455 = vrot.lane.b32.xlu0 %v372_v33, %s2509_s15 }
  0x26   : > { %461 = vrot.lane.b32.xlu1 %v390_v41, %s2509_s15  ;;  %459 = vrot.lane.b32.xlu0 %v384_v32, %s2509_s15 }
  0x2a   : > { %419 = vrot.lane.b32.xlu1 %v396_v44, %s2508_s14  ;;  %417 = vrot.lane.b32.xlu0 %v390_v41, %s2508_s14 }
  0x2e   : > { %423 = vrot.lane.b32.xlu1 %v408_v47, %s2508_s14  ;;  %421 = vrot.lane.b32.xlu0 %v402_v48, %s2508_s14 }
  0x32   : > { %443 = vrot.lane.b32.xlu1 %v2633_v40, %s2507_s11  ;;  %441 = vrot.lane.b32.xlu0 %v2612_v21, %s2507_s11 }
  0x36   : > { %447 = vrot.lane.b32.xlu1 %v2510_v49, %s2507_s11  ;;  %445 = vrot.lane.b32.xlu0 %v2627_v35, %s2507_s11 }
  0x3a   : > { %465 = vrot.lane.b32.xlu1 %v402_v48, %s2509_s15  ;;  %463 = vrot.lane.b32.xlu0 %v396_v44, %s2509_s15 }
  0x3e   : > { %469 = vrot.lane.b32.xlu1 %v2646_v50, %s2509_s15  ;;  %467 = vrot.lane.b32.xlu0 %v408_v47, %s2509_s15 }
  0x42   : > { %818 = vrot.lane.b32.xlu0 %v2646_v50, %s2511_s16 }
  0x84   : > { %v436_v51 = vpop.permute.xlu1 %435  ;;  %v434_v52 = vpop.permute.xlu0 %433 }
  0x88   : > { %v440_v53 = vpop.permute.xlu1 %439  ;;  %v438_v54 = vpop.permute.xlu0 %437 }
  0x8c   : > { %v414_v55 = vpop.permute.xlu1 %413  ;;  %v410_v56 = vpop.permute.xlu0 %409 }
  0x8d   : > { %v473_v59 = vsel %vm471_vm1, %v2602_v11, %v410_v56  ;;  %v477_v1 = vsel %vm471_vm1, %v2582_v3, %v414_v55  ;;  %v2463_v55 = vld [vmem:[%s3384_s4 + $0x80] sm:$0xff]  }
  0x8e   : > { %v490_v63 = vsel %vm488_vm2, %v473_v59, %v434_v52  ;;  %v494_v11 = vsel %vm488_vm2, %v477_v1, %v438_v54  ;;  %2422 = vmatprep.subr.bf16.mxu0 %v2463_v55 }
  0x90   : > { %v416_v57 = vpop.permute.xlu1 %415  ;;  %v412_v58 = vpop.permute.xlu0 %411 }
  0x91   : > { %v475_v60 = vsel %vm471_vm1, %v2585_v4, %v412_v58  ;;  %v479_v2 = vsel %vm471_vm1, %v2593_v6, %v416_v57 }
  0x92   : > { %v492_v62 = vsel %vm488_vm2, %v475_v60, %v436_v51  ;;  %v496_v8 = vsel %vm488_vm2, %v479_v2, %v440_v53 }
  0x94   : > { %v458_v61 = vpop.permute.xlu1 %457  ;;  %v456_v0 = vpop.permute.xlu0 %455 }
  0x95   : > { %v509_v5 = vsel %vm505_vm3, %v492_v62, %v458_v61  ;;  %v507_v7 = vsel %vm505_vm3, %v490_v63, %v456_v0  ;;  %v2464_v63 = vld [vmem:[%s3384_s4 + $0x88] sm:$0xff]  }
  0x96   : > { %v2231_v4 = vcombine.low %v507_v7, %v509_v5 }
  0x98   : > { %v462_v9 = vpop.permute.xlu1 %461  ;;  %2414 = vmatprep.mubr.msk.bf16.mxu0 %vm557_vm4, %v2231_v4  ;;  %v460_v12 = vpop.permute.xlu0 %459  ;;  %v337_v4 = vld [vmem:[%s2705_s30 + $0x8] sm:$0xf] }
  0x99   : > { %v513_v13 = vsel %vm505_vm3, %v496_v8, %v462_v9  ;;  %v511_v3 = vsel %vm505_vm3, %v494_v11, %v460_v12  ;;  %v338_v9 = vld [vmem:[%s2705_s30 + $0xc] sm:$0xf] }
  0x9a   : > { %v2232_v14 = vcombine.low %v511_v3, %v513_v13  ;;  %v335_v3 = vld [vmem:[%s2705_s30] sm:$0xf] }
  0x9c   : > { %v420_v15 = vpop.permute.xlu1 %419  ;;  %2415 = vmatmul.mubr.msk.bf16.vlgmr.msra.gmra.mrb[0].mxu0 %vm557_vm4, %v2232_v14  ;;  %v418_v6 = vpop.permute.xlu0 %417 }
  0x9d   : > { %v483_v20 = vsel %vm471_vm1, %v2612_v21, %v420_v15  ;;  %v481_v22 = vsel %vm471_vm1, %v2599_v10, %v418_v6  ;;  %2423 = vmatpush3.bf16.msra.mxu0 %v2463_v55  ;;  %v2471_v55 = vld [vmem:[%s3384_s4 + $0x58] sm:$0xff]  }
  0x9e   : > { %2424 = vmatprep.subr.bf16.mxu0 %v2464_v63 }
  0xa0   : > { %v424_v16 = vpop.permute.xlu1 %423  ;;  %v422_v17 = vpop.permute.xlu0 %421 }
  0xa1   : > { %v487_v27 = vsel %vm471_vm1, %v2627_v35, %v424_v16  ;;  %v485_v28 = vsel %vm471_vm1, %v2633_v40, %v422_v17  ;;  %2425 = vmatpush3.bf16.msra.mxu0 %v2464_v63 }
  0xa4   : > { %v444_v18 = vpop.permute.xlu1 %443  ;;  %v442_v19 = vpop.permute.xlu0 %441 }
  0xa5   : > { %v500_v25 = vsel %vm488_vm2, %v483_v20, %v444_v18  ;;  %v498_v26 = vsel %vm488_vm2, %v481_v22, %v442_v19  ;;  %v336_v18 = vld [vmem:[%s2705_s30 + $0x4] sm:$0xf] }
  0xa8   : > { %v448_v23 = vpop.permute.xlu1 %447  ;;  %v446_v24 = vpop.permute.xlu0 %445 }
  0xa9   : > { %v504_v10 = vsel %vm488_vm2, %v487_v27, %v448_v23  ;;  %v502_v32 = vsel %vm488_vm2, %v485_v28, %v446_v24 }
  0xac   : > { %v466_v29 = vpop.permute.xlu1 %465  ;;  %v464_v30 = vpop.permute.xlu0 %463 }
  0xad   : > { %v517_v31 = vsel %vm505_vm3, %v500_v25, %v466_v29  ;;  %v515_v21 = vsel %vm505_vm3, %v498_v26, %v464_v30 }
  0xae   : > { %v2233_v33 = vcombine.low %v515_v21, %v517_v31 }
  0xb0   : > { %v470_v34 = vpop.permute.xlu1 %469  ;;  %v468_v36 = vpop.permute.xlu0 %467  ;;  %2418 = vmatprep.mubr.msk.bf16.mxu0 %vm557_vm4, %v2233_v33  ;;  %v2466_v33 = vld [vmem:[%s3384_s4] sm:$0xff]  }
  0xb1   : > { %v521_v35 = vsel %vm505_vm3, %v504_v10, %v470_v34  ;;  %v519_v37 = vsel %vm505_vm3, %v502_v32, %v468_v36  ;;  %v2465_v10 = vld [vmem:[%s3384_s4 + $0x40] sm:$0xff]  }
  0xb2   : > { %v2234_v38 = vcombine.low %v519_v37, %v521_v35  ;;  %2320 = vmatprep.subr.bf16.mxu1 %v2465_v10 }
  0xb3   : > { %2321 = vmatpush3.bf16.msra.mxu1 %v2466_v33 }
  0xb4   : > { %2419 = vmatmul.mubr.msk.bf16.gmra.mrb[4].mxu0 %vm557_vm4, %v2234_v38  ;;  %v2698_v7 = vpop.permute.xlu0 %818 }
 0x16f   : > { %v2416_v40 = vpop.f32.mrb[0].mxu0 }
 0x170   : > { %v613_v41 = vadd.f32 %v2416_v40, %v2230_v39  ;;  %v604_v42 = vpop.f32.mrb[1].mxu0 }
 0x171   : > { %v2417_v43 = vpop.f32.mrb[2].mxu0  ;;  %v605_v45 = vadd.f32 %v2230_v39, %v604_v42 }
 0x172   : > { %v637_v44 = vpack.c.bf16 %v613_v41, %v613_v41  ;;  %v616_v46 = vadd.f32 %v2417_v43, %v2230_v39  ;;  %v607_v47 = vpop.f32.mrb[3].mxu0  ;;  %v2467_v41 = vld [vmem:[%s3384_s4 + $0x48] sm:$0xff]  }
 0x173   : > { %v608_v51 = vadd.f32 %v2230_v39, %v607_v47  ;;  %v635_v52 = vpack.c.bf16 %v605_v45, %v605_v45  ;;  %v2468_v43 = vld [vmem:[%s3384_s4 + $0x8] sm:$0xff]   ;;  %2322 = vmatprep.subr.bf16.mxu1 %v2467_v41  ;;  %v2479_v41 = vld [vmem:[%s3384_s4 + $0x78] sm:$0xff]  }
 0x174   : > { %v638_v48 = vpack.c.bf16 %v616_v46, %v616_v46  ;;  %655 = vrot.lane.b32.xlu0 %v637_v44, %s2512_s19  ;;  %2323 = vmatpush3.bf16.msra.mxu1 %v2468_v43  ;;  %v2480_v43 = vld [vmem:[%s3384_s4 + $0x38] sm:$0xff]  }
 0x175   : > { %v636_v53 = vpack.c.bf16 %v608_v51, %v608_v51 }
 0x176   : > { %657 = vrot.lane.b32.xlu1 %v638_v48, %s2512_s19  ;;  %v2469_v48 = vld [vmem:[%s3384_s4 + $0x50] sm:$0xff]  }
 0x177   : > { %2324 = vmatprep.subr.bf16.mxu1 %v2469_v48 }
 0x178   : > { %651 = vrot.lane.b32.xlu0 %v635_v52, %s2512_s19  ;;  %v2470_v52 = vld [vmem:[%s3384_s4 + $0x10] sm:$0xff]  }
 0x179   : > { %2325 = vmatpush3.bf16.msra.mxu1 %v2470_v52 }
 0x17a   : > { %653 = vrot.lane.b32.xlu1 %v636_v53, %s2512_s19  ;;  %2326 = vmatprep.subr.bf16.mxu1 %v2471_v55 }
 0x187   : > { %v2420_v54 = vpop.f32.mrb[4].mxu0 }
 0x188   : > { %v629_v56 = vadd.f32 %v2420_v54, %v2230_v39  ;;  %v620_v57 = vpop.f32.mrb[5].mxu0 }
 0x189   : > { %v2421_v58 = vpop.f32.mrb[6].mxu0  ;;  %v621_v60 = vadd.f32 %v2230_v39, %v620_v57  ;;  %v341_v57 = vld [vmem:[%s2705_s30 + $0x18] sm:$0xf] }
 0x18a   : > { %v641_v59 = vpack.c.bf16 %v629_v56, %v629_v56  ;;  %v632_v61 = vadd.f32 %v2421_v58, %v2230_v39  ;;  %v623_v62 = vpop.f32.mrb[7].mxu0  ;;  %v2472_v56 = vld [vmem:[%s3384_s4 + $0x18] sm:$0xff]  }
 0x18b   : > { %v624_v1 = vadd.f32 %v2230_v39, %v623_v62  ;;  %v639_v2 = vpack.c.bf16 %v621_v60, %v621_v60  ;;  %2327 = vmatpush3.bf16.msra.mxu1 %v2472_v56  ;;  %v2473_v60 = vld [vmem:[%s3384_s4 + $0x60] sm:$0xff]  }
 0x18c   : > { %v642_v0 = vpack.c.bf16 %v632_v61, %v632_v61  ;;  %663 = vrot.lane.b32.xlu0 %v641_v59, %s2512_s19  ;;  %v342_v59 = vld [vmem:[%s2705_s30 + $0x1c] sm:$0xf]  ;;  %v2474_v61 = vld [vmem:[%s3384_s4 + $0x20] sm:$0xff]   ;;  %2328 = vmatprep.subr.bf16.mxu1 %v2473_v60 }
 0x18d   : > { %v640_v5 = vpack.c.bf16 %v624_v1, %v624_v1 }
 0x18e   : > { %665 = vrot.lane.b32.xlu1 %v642_v0, %s2512_s19 }
 0x18f   : > { %2329 = vmatpush3.bf16.msra.mxu1 %v2474_v61 }
 0x190   : > { %659 = vrot.lane.b32.xlu0 %v639_v2, %s2512_s19  ;;  %v339_v2 = vld [vmem:[%s2705_s30 + $0x10] sm:$0xf] }
 0x192   : > { %661 = vrot.lane.b32.xlu1 %v640_v5, %s2512_s19 }
 0x194   : > { %849 = vrot.lane.b32.xlu0 %v2646_v50, %s2513_s24 }
 0x1e6   : > { %v656_v8 = vpop.permute.xlu0 %655 }
 0x1e7   : > { %v675_v11 = vsel %vm557_vm4, %v337_v4, %v656_v8 }
 0x1e8   : > { %v703_v12 = vshrl.u32 %v675_v11, 16  ;;  %v658_v13 = vpop.permute.xlu1 %657  ;;  %v706_v6 = vshll.u32 %v675_v11, 16 }
 0x1e9   : > { %v678_v14 = vsel %vm557_vm4, %v338_v9, %v658_v13 }
 0x1ea   : > { %v705_v15 = vrot.slane %v703_v12, 7  ;;  %v709_v16 = vshrl.u32 %v678_v14, 16  ;;  %v652_v17 = vpop.permute.xlu0 %651  ;;  %v712_v27 = vshll.u32 %v678_v14, 16  ;;  %v340_v12 = vld [vmem:[%s2705_s30 + $0x14] sm:$0xf] }
 0x1eb   : > { %v669_v20 = vsel %vm557_vm4, %v335_v3, %v652_v17  ;;  %v2475_v3 = vld [vmem:[%s3384_s4 + $0x68] sm:$0xff]  }
 0x1ec   : > { %v708_v23 = vor.u32 %v706_v6, %v705_v15  ;;  %v711_v24 = vrot.slane %v709_v16, 7  ;;  %v691_v25 = vshrl.u32 %v669_v20, 16  ;;  %v654_v26 = vpop.permute.xlu1 %653  ;;  %v694_v31 = vshll.u32 %v669_v20, 16  ;;  %v2476_v15 = vld [vmem:[%s3384_s4 + $0x28] sm:$0xff]   ;;  %2330 = vmatprep.subr.bf16.mxu1 %v2475_v3 }
 0x1ed   : > { %v672_v28 = vsel %vm557_vm4, %v336_v18, %v654_v26  ;;  %2331 = vmatpush3.bf16.msra.mxu1 %v2476_v15 }
 0x1ee   : > { %v752_v29 = vsel %vm2713_vm9, 0, %v708_v23  ;;  %v693_v30 = vrot.slane %v691_v25, 7  ;;  %v697_v21 = vshrl.u32 %v672_v28, 16  ;;  %v714_v34 = vor.u32 %v712_v27, %v711_v24 }
 0x1ef   : > { %v2730_v32 = vsel %vm2718_vm10, %v752_v29, 0  ;;  %v700_v37 = vshll.u32 %v672_v28, 16  ;;  %v2477_v28 = vld [vmem:[%s3384_s4 + $0x70] sm:$0xff]  }
 0x1f0   : > { %v696_v36 = vor.u32 %v694_v31, %v693_v30  ;;  %v699_v35 = vrot.slane %v697_v21, 7  ;;  %870 = vrot.lane.b32.xlu0 %v2730_v32, %s2514_s12  ;;  %908 = vrot.lane.b32.xlu1 %v2730_v32, %s2513_s24  ;;  %v844_v39 = vrot.slane %v2730_v32, 1  ;;  %v753_v44 = vsel %vm2713_vm9, 0, %v714_v34  ;;  %v2478_v31 = vld [vmem:[%s3384_s4 + $0x30] sm:$0xff]  }
 0x1f1   : > { %v2771_v51 = vsel %vm2718_vm10, %v753_v44, 0  ;;  %v786_v4 = vshll.u32 %v2730_v32, 16  ;;  %v784_v30 = vshrl.u32 %v2730_v32, 16  ;;  %2332 = vmatprep.subr.bf16.mxu1 %v2477_v28 }
 0x1f2   : > { %v702_v38 = vor.u32 %v700_v37, %v699_v35  ;;  %v750_v40 = vsel %vm2713_vm9, 0, %v696_v36  ;;  %v845_v13 = vrot.slane %v2771_v51, 1  ;;  %v793_v27 = vshll.u32 %v2771_v51, 16  ;;  %2333 = vmatpush3.bf16.msra.mxu1 %v2478_v31 }
 0x1f3   : > { %v2747_v42 = vsel %vm2718_vm10, %v750_v40, 0  ;;  %v788_v23 = vrot.slane %v786_v4, 1  ;;  %2334 = vmatprep.subr.bf16.mxu1 %v2479_v41 }
 0x1f4   : > { %v751_v45 = vsel %vm2713_vm9, 0, %v702_v38  ;;  %855 = vrot.lane.b32.xlu1 %v844_v39, %s2513_s24  ;;  %866 = vrot.lane.b32.xlu0 %v2747_v42, %s2514_s12  ;;  %v842_v54 = vrot.slane %v2747_v42, 1  ;;  %v772_v35 = vshll.u32 %v2747_v42, 16  ;;  %v795_v40 = vrot.slane %v793_v27, 1 }
 0x1f5   : > { %v2761_v46 = vsel %vm2718_vm10, %v751_v45, 0 }
 0x1f6   : > { %v2764_v47 = vrot.slane %v2761_v46, 1  ;;  %v774_v56 = vrot.slane %v772_v35, 1  ;;  %2335 = vmatpush3.bf16.msra.mxu1 %v2480_v43 }
 0x1f8   : > { %872 = vrot.lane.b32.xlu1 %v2771_v51, %s2514_s12  ;;  %894 = vrot.lane.b32.xlu0 %v844_v39, %s2511_s16  ;;  %v2243_v53 = vcombine.low %v2764_v47, %v844_v39  ;;  %v2835_v39 = vor.u32 %v788_v23, %v784_v30 }
 0x1fa   : > { %2426 = vmatprep.mubr.msk.bf16.mxu0 %vm938_vm11, %v2243_v53  ;;  %v791_v53 = vshrl.u32 %v2771_v51, 16 }
 0x1fc   : > { %910 = vrot.lane.b32.xlu0 %v2771_v51, %s2513_s24  ;;  %851 = vrot.lane.b32.xlu1 %v842_v54, %s2513_s24 }
 0x1fe   : > { %v664_v58 = vpop.permute.xlu0 %663 }
 0x1ff   : > { %v687_v62 = vsel %vm557_vm4, %v341_v57, %v664_v58  ;;  %v779_v57 = vshll.u32 %v2761_v46, 16 }
 0x200   : > { %v727_v63 = vshrl.u32 %v687_v62, 16  ;;  %v730_v0 = vshll.u32 %v687_v62, 16  ;;  %v666_v1 = vpop.permute.xlu1 %665  ;;  %868 = vrot.lane.b32.xlu1 %v2761_v46, %s2514_s12  ;;  %890 = vrot.lane.b32.xlu0 %v842_v54, %s2511_s16 }
 0x201   : > { %v690_v5 = vsel %vm557_vm4, %v342_v59, %v666_v1  ;;  %v2866_v59 = vor.u32 %v795_v40, %v791_v53  ;;  %v781_v1 = vrot.slane %v779_v57, 1 }
 0x202   : > { %v729_v8 = vrot.slane %v727_v63, 7  ;;  %v733_v9 = vshrl.u32 %v690_v5, 16  ;;  %v660_v11 = vpop.permute.xlu0 %659  ;;  %v736_v29 = vshll.u32 %v690_v5, 16  ;;  %v770_v63 = vshrl.u32 %v2747_v42, 16 }
 0x203   : > { %v681_v14 = vsel %vm557_vm4, %v339_v2, %v660_v11  ;;  %v777_v5 = vshrl.u32 %v2761_v46, 16 }
 0x204   : > { %v732_v6 = vor.u32 %v730_v0, %v729_v8  ;;  %v715_v16 = vshrl.u32 %v681_v14, 16  ;;  %v662_v17 = vpop.permute.xlu1 %661  ;;  %896 = vrot.lane.b32.xlu1 %v845_v13, %s2511_s16  ;;  %906 = vrot.lane.b32.xlu0 %v2761_v46, %s2513_s24  ;;  %v735_v18 = vrot.slane %v733_v9, 7  ;;  %v718_v25 = vshll.u32 %v681_v14, 16 }
 0x205   : > { %v684_v20 = vsel %vm557_vm4, %v340_v12, %v662_v17  ;;  %v2879_v0 = vor.u32 %v774_v56, %v770_v63  ;;  %v2886_v4 = vor.u32 %v781_v1, %v777_v5 }
 0x206   : > { %v717_v24 = vrot.slane %v715_v16, 7  ;;  %v721_v26 = vshrl.u32 %v684_v20, 16  ;;  %v756_v21 = vsel %vm2713_vm9, 0, %v732_v6  ;;  %v724_v34 = vshll.u32 %v684_v20, 16  ;;  %v850_v27 = vpop.permute.xlu0 %849 }
 0x207   : > { %v738_v36 = vor.u32 %v736_v29, %v735_v18  ;;  %v2845_v44 = vsel %vm2718_vm10, %v756_v21, 0 }
 0x208   : > { %v720_v10 = vor.u32 %v718_v25, %v717_v24  ;;  %v723_v33 = vrot.slane %v721_v26, 7  ;;  %892 = vrot.lane.b32.xlu1 %v2764_v47, %s2511_s16  ;;  %857 = vrot.lane.b32.xlu0 %v845_v13, %s2513_s24  ;;  %v814_v9 = vshll.u32 %v2845_v44, 16  ;;  %v812_v12 = vshrl.u32 %v2845_v44, 16 }
 0x209   : > { %v757_v54 = vsel %vm2713_vm9, 0, %v738_v36 }
 0x20a   : > { %v754_v37 = vsel %vm2713_vm9, 0, %v720_v10  ;;  %v726_v38 = vor.u32 %v724_v34, %v723_v33  ;;  %v768_v61 = vsel %vm2718_vm10, %v757_v54, 0  ;;  %v816_v11 = vrot.slane %v814_v9, 1 }
 0x20b   : > { %v2849_v45 = vsel %vm2718_vm10, %v754_v37, 0  ;;  %v889_v2 = vrot.slane %v768_v61, 1  ;;  %v885_v16 = vshll.u32 %v768_v61, 16  ;;  %v883_v25 = vshrl.u32 %v768_v61, 16 }
 0x20c   : > { %v755_v48 = vsel %vm2713_vm9, 0, %v726_v38  ;;  %v846_v52 = vrot.slane %v2849_v45, 1  ;;  %924 = vrot.lane.b32.xlu1 %v2835_v39, %s2514_s12  ;;  %853 = vrot.lane.b32.xlu0 %v2764_v47, %s2513_s24  ;;  %v848_v47 = vrot.slane %v2845_v44, 1  ;;  %v800_v14 = vshll.u32 %v2849_v45, 16 }
 0x20d   : > { %v2863_v55 = vsel %vm2718_vm10, %v755_v48, 0  ;;  %v2252_v8 = vcombine.low %v889_v2, %v2646_v50  ;;  %v798_v18 = vshrl.u32 %v2849_v45, 16  ;;  %v887_v24 = vrot.slane %v885_v16, 1 }
 0x20e   : > { %v2246_v58 = vcombine.low %v845_v13, %v846_v52  ;;  %v847_v60 = vrot.slane %v2863_v55, 1  ;;  %v2910_v13 = vor.u32 %v816_v11, %v812_v12  ;;  %v807_v3 = vshll.u32 %v2863_v55, 16 }
 0x20f   : > { %v802_v6 = vrot.slane %v800_v14, 1  ;;  %v805_v17 = vshrl.u32 %v2863_v55, 16  ;;  %v2931_v26 = vor.u32 %v887_v24, %v883_v25 }
 0x210   : > { %824 = vrot.lane.b32.xlu1 %v2835_v39, %s2511_s16  ;;  %926 = vrot.lane.b32.xlu0 %v2866_v59, %s2514_s12  ;;  %v2249_v62 = vcombine.low %v847_v60, %v848_v47  ;;  %v809_v15 = vrot.slane %v807_v3, 1 }
 0x211   : > { %2427 = vmatmul.mubr.msk.bf16.vlgmr.msra.gmra.mrb[8].mxu0 %vm938_vm11, %v2246_v58  ;;  %v2925_v23 = vor.u32 %v802_v6, %v798_v18 }
 0x212   : > { %2430 = vmatprep.mubr.msk.bf16.mxu0 %vm938_vm11, %v2249_v62  ;;  %v2923_v20 = vor.u32 %v809_v15, %v805_v17 }
 0x214   : > { %826 = vrot.lane.b32.xlu0 %v2866_v59, %s2511_s16  ;;  %820 = vrot.lane.b32.xlu1 %v2879_v0, %s2511_s16 }
 0x218   : > { %922 = vrot.lane.b32.xlu0 %v2886_v4, %s2514_s12  ;;  %916 = vrot.lane.b32.xlu1 %v2845_v44, %s2513_s24 }
 0x219   : > { %2431 = vmatmul.mubr.msk.bf16.gmra.mrb[12].mxu0 %vm938_vm11, %v2252_v8 }
 0x21c   : > { %822 = vrot.lane.b32.xlu0 %v2886_v4, %s2511_s16  ;;  %912 = vrot.lane.b32.xlu1 %v2849_v45, %s2513_s24 }
 0x220   : > { %874 = vrot.lane.b32.xlu0 %v2849_v45, %s2514_s12  ;;  %859 = vrot.lane.b32.xlu1 %v846_v52, %s2513_s24 }
 0x224   : > { %902 = vrot.lane.b32.xlu0 %v848_v47, %s2511_s16  ;;  %876 = vrot.lane.b32.xlu1 %v2863_v55, %s2514_s12 }
 0x228   : > { %918 = vrot.lane.b32.xlu0 %v768_v61, %s2513_s24  ;;  %904 = vrot.lane.b32.xlu1 %v889_v2, %s2511_s16 }
 0x22c   : > { %900 = vrot.lane.b32.xlu1 %v847_v60, %s2511_s16  ;;  %898 = vrot.lane.b32.xlu0 %v846_v52, %s2511_s16 }
 0x230   : > { %932 = vrot.lane.b32.xlu1 %v2910_v13, %s2514_s12  ;;  %914 = vrot.lane.b32.xlu0 %v2863_v55, %s2513_s24 }
 0x234   : > { %832 = vrot.lane.b32.xlu1 %v2910_v13, %s2511_s16  ;;  %861 = vrot.lane.b32.xlu0 %v847_v60, %s2513_s24 }
 0x238   : > { %930 = vrot.lane.b32.xlu0 %v2923_v20, %s2514_s12  ;;  %928 = vrot.lane.b32.xlu1 %v2925_v23, %s2514_s12 }
 0x23c   : > { %934 = vrot.lane.b32.xlu0 %v2931_v26, %s2514_s12  ;;  %920 = vrot.lane.b32.xlu1 %v2510_v49, %s2513_s24 }
 0x240   : > { %830 = vrot.lane.b32.xlu0 %v2923_v20, %s2511_s16  ;;  %828 = vrot.lane.b32.xlu1 %v2925_v23, %s2511_s16 }
 0x244   : > { %878 = vrot.lane.b32.xlu0 %v2845_v44, %s2514_s12  ;;  %863 = vrot.lane.b32.xlu1 %v848_v47, %s2513_s24 }
 0x248   : > { %936 = vrot.lane.b32.xlu1 %v2646_v50, %s2514_s12 }
 0x24c   : > { %880 = vrot.lane.b32.xlu1 %v768_v61, %s2514_s12 }
 0x262   : > { %v909_v28 = vpop.permute.xlu1 %908  ;;  %v871_v29 = vpop.permute.xlu0 %870 }
 0x266   : > { %v856_v49 = vpop.permute.xlu1 %855  ;;  %v867_v30 = vpop.permute.xlu0 %866 }
 0x26a   : > { %v873_v31 = vpop.permute.xlu1 %872  ;;  %v895_v21 = vpop.permute.xlu0 %894 }
 0x26e   : > { %v852_v10 = vpop.permute.xlu1 %851  ;;  %v911_v33 = vpop.permute.xlu0 %910 }
 0x272   : > { %v869_v34 = vpop.permute.xlu1 %868  ;;  %v891_v36 = vpop.permute.xlu0 %890 }
 0x273   : > { %v991_v62 = vsel %vm938_vm11, %v2879_v0, %v891_v36 }
 0x276   : > { %v897_v35 = vpop.permute.xlu1 %896  ;;  %v907_v37 = vpop.permute.xlu0 %906 }
 0x277   : > { %v1014_v63 = vsel %vm955_vm12, %v991_v62, %v907_v37  ;;  %v1000_v37 = vsel %vm938_vm11, %v2866_v59, %v897_v35 }
 0x27a   : > { %v893_v38 = vpop.permute.xlu1 %892  ;;  %v2947_v40 = vpop.permute.xlu0 %857 }
 0x27b   : > { %v994_v60 = vsel %vm938_vm11, %v2886_v4, %v893_v38 }
 0x27c   : > { %v1016_v5 = vsel %vm955_vm12, %v994_v60, %v909_v28 }
 0x27e   : > { %v925_v41 = vpop.permute.xlu1 %924  ;;  %v854_v43 = vpop.permute.xlu0 %853 }
 0x27f   : > { %v1032_v9 = vsel %vm972_vm13, %v1016_v5, %v925_v41 }
 0x282   : > { %v825_v48 = vpop.permute.xlu1 %824  ;;  %v927_v52 = vpop.permute.xlu0 %926 }
 0x283   : > { %v946_v53 = vsel %vm938_vm11, %v2730_v32, %v825_v48  ;;  %v940_v32 = vsel %vm938_vm11, 0, %v2698_v7 }
 0x284   : > { %v963_v54 = vsel %vm955_vm12, %v946_v53, %v856_v49  ;;  %v2966_v4 = vsel %vm955_vm12, %v940_v32, %v850_v27 }
 0x285   : > { %v980_v56 = vsel %vm972_vm13, %v963_v54, %v873_v31  ;;  %v974_v0 = vsel %vm972_vm13, %v2966_v4, %v867_v30 }
 0x286   : > { %v821_v57 = vpop.permute.xlu1 %820  ;;  %v827_v58 = vpop.permute.xlu0 %826 }
 0x287   : > { %v942_v47 = vsel %vm938_vm11, %v2747_v42, %v821_v57  ;;  %v948_v60 = vsel %vm938_vm11, %v2771_v51, %v827_v58 }
 0x288   : > { %v959_v61 = vsel %vm955_vm12, %v942_v47, %v852_v10 }
 0x289   : > { %v976_v8 = vsel %vm972_vm13, %v959_v61, %v869_v34  ;;  %v965_v61 = vsel %vm955_vm12, %v948_v60, %v2947_v40 }
 0x28a   : > { %v917_v1 = vpop.permute.xlu1 %916  ;;  %v923_v2 = vpop.permute.xlu0 %922  ;;  %v2241_v7 = vcombine.low %v974_v0, %v976_v8 }
 0x28b   : > { %v1030_v42 = vsel %vm972_vm13, %v1014_v63, %v923_v2 }
 0x28c   : > { %v2242_v11 = vcombine.low %v1030_v42, %v1032_v9 }
 0x28e   : > { %v913_v12 = vpop.permute.xlu1 %912  ;;  %1300 = vmatprep.mubr.bf16.mxu1 %v2242_v11  ;;  %v823_v3 = vpop.permute.xlu0 %822 }
 0x28f   : > { %v944_v14 = vsel %vm938_vm11, %v2761_v46, %v823_v3  ;;  %1301 = vmatmul.mubr.bf16.vlgmr.msra.gmra.mrb[0].mxu1 %v2241_v7  ;;  %v997_v46 = vsel %vm938_vm11, %v2835_v39, %v895_v21 }
 0x290   : > { %v961_v15 = vsel %vm955_vm12, %v944_v14, %v854_v43  ;;  %v1018_v41 = vsel %vm955_vm12, %v997_v46, %v911_v33  ;;  %v1020_v43 = vsel %vm955_vm12, %v1000_v37, %v913_v12 }
 0x291   : > { %v978_v6 = vsel %vm972_vm13, %v961_v15, %v871_v29 }
 0x292   : > { %v860_v16 = vpop.permute.xlu1 %859  ;;  %v875_v17 = vpop.permute.xlu0 %874  ;;  %v2244_v18 = vcombine.low %v978_v6, %v980_v56  ;;  %v1034_v56 = vsel %vm972_vm13, %v1018_v41, %v927_v52 }
 0x293   : > { %v982_v32 = vsel %vm972_vm13, %v965_v61, %v875_v17 }
 0x296   : > { %v877_v24 = vpop.permute.xlu1 %876  ;;  %v903_v25 = vpop.permute.xlu0 %902 }
 0x297   : > { %v1009_v51 = vsel %vm938_vm11, %v2910_v13, %v903_v25 }
 0x29a   : > { %v905_v27 = vpop.permute.xlu1 %904  ;;  %v919_v28 = vpop.permute.xlu0 %918 }
 0x29b   : > { %v1012_v58 = vsel %vm938_vm11, %v2931_v26, %v905_v27 }
 0x29e   : > { %v901_v49 = vpop.permute.xlu1 %900  ;;  %v899_v30 = vpop.permute.xlu0 %898 }
 0x29f   : > { %v1006_v29 = vsel %vm938_vm11, %v2923_v20, %v901_v49  ;;  %v1003_v38 = vsel %vm938_vm11, %v2925_v23, %v899_v30  ;;  %v2482_v49 = vld [vmem:[%s3386_s6 + $0x88] sm:$0xff]  }
 0x2a0   : > { %v1024_v21 = vsel %vm955_vm12, %v1006_v29, %v917_v1 }
 0x2a2   : > { %v933_v31 = vpop.permute.xlu1 %932  ;;  %v915_v10 = vpop.permute.xlu0 %914 }
 0x2a3   : > { %v1022_v48 = vsel %vm955_vm12, %v1003_v38, %v915_v10  ;;  %v1040_v35 = vsel %vm972_vm13, %v1024_v21, %v933_v31  ;;  %v3044_v31 = vld [vmem:[%s3385_s5] ss:$0 sm:$0xff] }
 0x2a6   : > { %v833_v34 = vpop.permute.xlu1 %832  ;;  %v862_v36 = vpop.permute.xlu0 %861 }
 0x2a7   : > { %v954_v26 = vsel %vm938_vm11, %v2845_v44, %v833_v34 }
 0x2aa   : > { %v929_v53 = vpop.permute.xlu1 %928  ;;  %v931_v54 = vpop.permute.xlu0 %930 }
 0x2ab   : > { %v1036_v39 = vsel %vm972_vm13, %v1020_v43, %v929_v53  ;;  %v1038_v59 = vsel %vm972_vm13, %v1022_v48, %v931_v54 }
 0x2ac   : > { %v2245_v20 = vcombine.low %v1034_v56, %v1036_v39  ;;  %v2248_v23 = vcombine.low %v1038_v59, %v1040_v35 }
 0x2ae   : > { %v2992_v57 = vpop.permute.xlu1 %920  ;;  %1308 = vmatprep.mubr.bf16.mxu1 %v2245_v20  ;;  %v935_v33 = vpop.permute.xlu0 %934 }
 0x2af   : > { %1309 = vmatmul.mubr.bf16.gmra.mrb[4].mxu1 %v2244_v18  ;;  %v1028_v40 = vsel %vm955_vm12, %v1012_v58, %v2992_v57  ;;  %v2485_v58 = vld [vmem:[%s3386_s6 + $0x48] sm:$0xff]  }
 0x2b0   : > { %1316 = vmatprep.mubr.bf16.mxu1 %v2248_v23 }
 0x2b2   : > { %v829_v52 = vpop.permute.xlu1 %828  ;;  %v831_v1 = vpop.permute.xlu0 %830 }
 0x2b3   : > { %v950_v47 = vsel %vm938_vm11, %v2849_v45, %v829_v52  ;;  %v1026_v45 = vsel %vm955_vm12, %v1009_v51, %v919_v28  ;;  %v952_v9 = vsel %vm938_vm11, %v2863_v55, %v831_v1  ;;  %v2481_v28 = vld [vmem:[%s3386_s6 + $0x80] sm:$0xff]  }
 0x2b4   : > { %v967_v62 = vsel %vm955_vm12, %v950_v47, %v860_v16  ;;  %v1042_v42 = vsel %vm972_vm13, %v1026_v45, %v935_v33  ;;  %v969_v12 = vsel %vm955_vm12, %v952_v9, %v862_v36  ;;  %2434 = vmatprep.subr.bf16.mxu1 %v2481_v28  ;;  %v2484_v51 = vld [vmem:[%s3386_s6] sm:$0xff]   ;;  %v2486_v45 = vld [vmem:[%s3386_s6 + $0x8] sm:$0xff]   ;;  %v2487_v9 = vld [vmem:[%s3386_s6 + $0x50] sm:$0xff]  }
 0x2b5   : > { %v984_v63 = vsel %vm972_vm13, %v967_v62, %v877_v24  ;;  %2435 = vmatpush3.bf16.msra.mxu1 %v2481_v28 }
 0x2b6   : > { %v864_v2 = vpop.permute.xlu1 %863  ;;  %v2247_v5 = vcombine.low %v982_v32, %v984_v63  ;;  %v879_v11 = vpop.permute.xlu0 %878  ;;  %2436 = vmatprep.subr.bf16.mxu1 %v2482_v49 }
 0x2b7   : > { %v971_v7 = vsel %vm955_vm12, %v954_v26, %v864_v2  ;;  %v986_v14 = vsel %vm972_vm13, %v969_v12, %v879_v11  ;;  %v2488_v11 = vld [vmem:[%s3386_s6 + $0x10] sm:$0xff]   ;;  %v2489_v26 = vld [vmem:[%s3386_s6 + $0x58] sm:$0xff]  }
 0x2b8   : > { %1317 = vmatmul.mubr.bf16.gmra.mrb[8].mxu1 %v2247_v5  ;;  %v2483_v5 = vld [vmem:[%s3386_s6 + $0x40] sm:$0xff]  }
 0x2b9   : > { %2437 = vmatpush3.bf16.msra.mxu1 %v2482_v49  ;;  %2366 = vmatprep.subr.bf16.mxu0 %v2483_v5 }
 0x2ba   : > { %v3010_v8 = vpop.permute.xlu1 %936  ;;  %2367 = vmatpush3.bf16.msra.mxu0 %v2484_v51  ;;  %v2495_v51 = vld [vmem:[%s3386_s6 + $0x70] sm:$0xff]  }
 0x2bb   : > { %v1044_v0 = vsel %vm972_vm13, %v1028_v40, %v3010_v8  ;;  %2368 = vmatprep.subr.bf16.mxu0 %v2485_v58 }
 0x2bc   : > { %v2251_v13 = vcombine.low %v1042_v42, %v1044_v0 }
 0x2be   : > { %v881_v3 = vpop.permute.xlu1 %880  ;;  %1324 = vmatprep.mubr.bf16.mxu1 %v2251_v13  ;;  %2369 = vmatpush3.bf16.msra.mxu0 %v2486_v45 }
 0x2bf   : > { %v988_v15 = vsel %vm972_vm13, %v971_v7, %v881_v3  ;;  %2370 = vmatprep.subr.bf16.mxu0 %v2487_v9 }
 0x2c0   : > { %v2250_v6 = vcombine.low %v986_v14, %v988_v15  ;;  %v2490_v15 = vld [vmem:[%s3386_s6 + $0x18] sm:$0xff]  }
 0x2c2   : > { %1325 = vmatmul.mubr.bf16.gmra.mrb[12].mxu1 %v2250_v6  ;;  %2371 = vmatpush3.bf16.msra.mxu0 %v2488_v11 }
 0x2c3   : > { %2372 = vmatprep.subr.bf16.mxu0 %v2489_v26 }
 0x2c6   : > { %2373 = vmatpush3.bf16.msra.mxu0 %v2490_v15 }
 0x2e4   : > { %v3023_v55 = vpop.f32.mrb[8].mxu0 }
 0x2e5   : > { %v1367_v16 = vpop.f32.mrb[9].mxu0 }
 0x2e6   : > { %v3025_v17 = vpop.f32.mrb[10].mxu0 }
 0x2e7   : > { %v1370_v18 = vpop.f32.mrb[11].mxu0 }
 0x2ec   : > { %v3027_v24 = vpop.f32.mrb[12].mxu0 }
 0x2ed   : > { %v3029_v44 = vpop.f32.mrb[13].mxu0 }
 0x2ee   : > { %v3031_v25 = vpop.f32.mrb[14].mxu0 }
 0x2ef   : > { %v3033_v27 = vpop.f32.mrb[15].mxu0 }
 0x362   : > { %v2336_v30 = vpop.f32.mrb[0].mxu1 }
 0x363   : > { %v2337_v10 = vpop.f32.mrb[1].mxu1 }
 0x364   : > { %v2338_v34 = vadd.f32 %v2337_v10, %v2336_v30  ;;  %v2339_v36 = vpop.f32.mrb[2].mxu1 }
 0x365   : > { %v2340_v46 = vpop.f32.mrb[3].mxu1 }
 0x366   : > { %v1303_v37 = vadd.f32 %v2338_v34, %v3044_v31  ;;  %v2341_v29 = vadd.f32 %v2340_v46, %v2339_v36  ;;  %v2491_v36 = vld [vmem:[%s3386_s6 + $0x60] sm:$0xff]  }
 0x367   : > { %v2492_v46 = vld [vmem:[%s3386_s6 + $0x20] sm:$0xff]   ;;  %2374 = vmatprep.subr.bf16.mxu0 %v2491_v36  ;;  %v2497_v36 = vld [vmem:[%s3386_s6 + $0x78] sm:$0xff]  }
 0x368   : > { %v1368_v38 = vadd.f32 %v1367_v16, %v1303_v37  ;;  %v1306_v41 = vadd.f32 %v2341_v29, %v3044_v31  ;;  %2375 = vmatpush3.bf16.msra.mxu0 %v2492_v46  ;;  %v2498_v46 = vld [vmem:[%s3386_s6 + $0x38] sm:$0xff]  }
 0x36a   : > { %vm1398_vm14 = vcmp.ge.f32.partialorder %v1368_v38, 0.0  ;;  %v1406_v43 = vmul.f32 0.2, %v1368_v38  ;;  %v1371_v48 = vadd.f32 %v1370_v18, %v1306_v41 }
 0x36c   : > { %v1414_v53 = vsel %vm1398_vm14, %v1368_v38, %v1406_v43  ;;  %vm1399_vm15 = vcmp.ge.f32.partialorder %v1371_v48, 0.0  ;;  %v1407_v54 = vmul.f32 0.2, %v1371_v48 }
 0x36d   : > { %v1422_v56 = vpack.c.bf16 %v1414_v53, %v1414_v53 }
 0x36e   : > { %v1415_v39 = vsel %vm1399_vm15, %v1371_v48, %v1407_v54 }
 0x36f   : > { %v1423_v59 = vpack.c.bf16 %v1415_v39, %v1415_v39  ;;  %v1431_v21 = vshrl.u32 %v1422_v56, 16  ;;  %v1434_v23 = vshll.u32 %v1422_v56, 16  ;;  %v2493_v39 = vld [vmem:[%s3386_s6 + $0x68] sm:$0xff]  }
 0x370   : > { %2376 = vmatprep.subr.bf16.mxu0 %v2493_v39 }
 0x371   : > { %v1438_v20 = vshrl.u32 %v1423_v59, 16  ;;  %v1433_v35 = vrot.slane %v1431_v21, 7  ;;  %v1441_v60 = vshll.u32 %v1423_v59, 16  ;;  %v2494_v59 = vld [vmem:[%s3386_s6 + $0x28] sm:$0xff]  }
 0x372   : > { %2377 = vmatpush3.bf16.msra.mxu0 %v2494_v59 }
 0x373   : > { %v1440_v33 = vrot.slane %v1438_v20, 7  ;;  %v1436_v52 = vor.u32 %v1434_v23, %v1433_v35  ;;  %2378 = vmatprep.subr.bf16.mxu0 %v2495_v51 }
 0x375   : > { %v1494_v47 = vsel %vm2713_vm9, 0, %v1436_v52  ;;  %v1443_v61 = vor.u32 %v1441_v60, %v1440_v33 }
 0x376   : > { %v3052_v62 = vsel %vm2718_vm10, %v1494_v47, 0 }
 0x377   : > { %1602 = vrot.lane.b32.xlu0 %v3052_v62, %s2514_s12  ;;  %v1495_v32 = vsel %vm2713_vm9, 0, %v1443_v61  ;;  %v1580_v1 = vrot.slane %v3052_v62, 1  ;;  %v1513_v2 = vshll.u32 %v3052_v62, 16  ;;  %v1511_v0 = vshrl.u32 %v3052_v62, 16 }
 0x378   : > { %v3060_v63 = vsel %vm2718_vm10, %v1495_v32, 0 }
 0x379   : > { %1642 = vrot.lane.b32.xlu1 %v3060_v63, %s2513_s24  ;;  %v3081_v40 = vrot.slane %v3060_v63, 1  ;;  %v1515_v42 = vrot.slane %v1513_v2, 1  ;;  %v1520_v20 = vshll.u32 %v3060_v63, 16  ;;  %v1518_v9 = vshrl.u32 %v3060_v63, 16 }
 0x37b   : > { %1626 = vrot.lane.b32.xlu0 %v1580_v1, %s2511_s16  ;;  %v3094_v13 = vor.u32 %v1515_v42, %v1511_v0  ;;  %v1522_v5 = vrot.slane %v1520_v20, 1 }
 0x37d   : > { %1587 = vrot.lane.b32.xlu1 %v1580_v1, %s2513_s24 }
 0x37f   : > { %1589 = vrot.lane.b32.xlu0 %v3081_v40, %s2513_s24 }
 0x381   : > { %1604 = vrot.lane.b32.xlu1 %v3060_v63, %s2514_s12 }
 0x382   : > { %v2342_v7 = vpop.f32.mrb[4].mxu1 }
 0x383   : > { %1559 = vrot.lane.b32.xlu0 %v3094_v13, %s2511_s16  ;;  %v2343_v12 = vpop.f32.mrb[5].mxu1 }
 0x384   : > { %v2344_v3 = vadd.f32 %v2343_v12, %v2342_v7  ;;  %v2345_v14 = vpop.f32.mrb[6].mxu1 }
 0x385   : > { %1628 = vrot.lane.b32.xlu1 %v3081_v40, %s2511_s16  ;;  %v2346_v6 = vpop.f32.mrb[7].mxu1 }
 0x386   : > { %v1311_v16 = vadd.f32 %v2344_v3, %v3044_v31  ;;  %v2347_v18 = vadd.f32 %v2346_v6, %v2345_v14 }
 0x388   : > { %v1376_v28 = vadd.f32 %v3023_v55, %v1311_v16  ;;  %v1314_v49 = vadd.f32 %v2347_v18, %v3044_v31 }
 0x38a   : > { %vm1400_vm0 = vcmp.ge.f32.partialorder %v1376_v28, 0.0  ;;  %v1408_v30 = vmul.f32 0.2, %v1376_v28  ;;  %v1379_v10 = vadd.f32 %v3025_v17, %v1314_v49 }
 0x38b   : > { %v2348_v34 = vpop.f32.mrb[8].mxu1 }
 0x38c   : > { %v1416_v37 = vsel %vm1400_vm0, %v1376_v28, %v1408_v30  ;;  %vm1401_vm1 = vcmp.ge.f32.partialorder %v1379_v10, 0.0  ;;  %v1409_v29 = vmul.f32 0.2, %v1379_v10  ;;  %v2349_v55 = vpop.f32.mrb[9].mxu1  ;;  %v3145_v28 = vor.u32 %v1522_v5, %v1518_v9 }
 0x38d   : > { %v1424_v38 = vpack.c.bf16 %v1416_v37, %v1416_v37  ;;  %v2350_v41 = vadd.f32 %v2349_v55, %v2348_v34  ;;  %v2351_v43 = vpop.f32.mrb[10].mxu1 }
 0x38e   : > { %v1417_v48 = vsel %vm1401_vm1, %v1379_v10, %v1409_v29  ;;  %v2352_v53 = vpop.f32.mrb[11].mxu1 }
 0x38f   : > { %v1445_v17 = vshrl.u32 %v1424_v38, 16  ;;  %v1425_v54 = vpack.c.bf16 %v1417_v48, %v1417_v48  ;;  %v1319_v56 = vadd.f32 %v2350_v41, %v3044_v31  ;;  %v2353_v21 = vadd.f32 %v2352_v53, %v2351_v43 }
 0x390   : > { %v1448_v23 = vshll.u32 %v1424_v38, 16 }
 0x391   : > { %v1447_v35 = vrot.slane %v1445_v17, 7  ;;  %v1452_v33 = vshrl.u32 %v1425_v54, 16  ;;  %v1384_v60 = vadd.f32 %v3029_v44, %v1319_v56  ;;  %v1455_v52 = vshll.u32 %v1425_v54, 16  ;;  %v2496_v44 = vld [vmem:[%s3386_s6 + $0x30] sm:$0xff]  }
 0x392   : > { %v1322_v47 = vadd.f32 %v2353_v21, %v3044_v31  ;;  %2379 = vmatpush3.bf16.msra.mxu0 %v2496_v44 }
 0x393   : > { %v1454_v61 = vrot.slane %v1452_v33, 7  ;;  %vm1402_vm2 = vcmp.ge.f32.partialorder %v1384_v60, 0.0  ;;  %v1410_v32 = vmul.f32 0.2, %v1384_v60  ;;  %v1450_v1 = vor.u32 %v1448_v23, %v1447_v35  ;;  %2380 = vmatprep.subr.bf16.mxu0 %v2497_v36 }
 0x394   : > { %v1387_v2 = vadd.f32 %v3033_v27, %v1322_v47 }
 0x395   : > { %v1418_v58 = vsel %vm1402_vm2, %v1384_v60, %v1410_v32  ;;  %v2354_v45 = vpop.f32.mrb[12].mxu1  ;;  %v1496_v42 = vsel %vm2713_vm9, 0, %v1450_v1  ;;  %v1457_v0 = vor.u32 %v1455_v52, %v1454_v61 }
 0x396   : > { %v1426_v11 = vpack.c.bf16 %v1418_v58, %v1418_v58  ;;  %vm1403_vm3 = vcmp.ge.f32.partialorder %v1387_v2, 0.0  ;;  %v1411_v27 = vmul.f32 0.2, %v1387_v2  ;;  %v2355_v26 = vpop.f32.mrb[13].mxu1  ;;  %v3138_v7 = vsel %vm2718_vm10, %v1496_v42, 0  ;;  %2381 = vmatpush3.bf16.msra.mxu0 %v2498_v46 }
 0x397   : > { %v2356_v12 = vadd.f32 %v2355_v26, %v2354_v45  ;;  %1644 = vrot.lane.b32.xlu0 %v3138_v7, %s2513_s24  ;;  %v2357_v3 = vpop.f32.mrb[14].mxu1  ;;  %v1582_v14 = vrot.slane %v3138_v7, 1  ;;  %v1497_v15 = vsel %vm2713_vm9, 0, %v1457_v0  ;;  %v1525_v33 = vshrl.u32 %v3138_v7, 16 }
 0x398   : > { %v1459_v6 = vshrl.u32 %v1426_v11, 16  ;;  %v1419_v16 = vsel %vm1403_vm3, %v1387_v2, %v1411_v27  ;;  %v2358_v18 = vpop.f32.mrb[15].mxu1  ;;  %v1462_v29 = vshll.u32 %v1426_v11, 16  ;;  %v3158_v55 = vsel %vm2718_vm10, %v1497_v15, 0 }
 0x399   : > { %v1427_v49 = vpack.c.bf16 %v1419_v16, %v1419_v16  ;;  %v1327_v30 = vadd.f32 %v2356_v12, %v3044_v31  ;;  %v2359_v10 = vadd.f32 %v2358_v18, %v2357_v3  ;;  %1591 = vrot.lane.b32.xlu1 %v1582_v14, %s2513_s24  ;;  %v2278_v34 = vcombine.low %v3081_v40, %v1582_v14 }
 0x39a   : > { %v1461_v37 = vrot.slane %v1459_v6, 7  ;;  %v1527_v40 = vshll.u32 %v3138_v7, 16  ;;  %v1583_v56 = vrot.slane %v3158_v55, 1  ;;  %v1534_v27 = vshll.u32 %v3158_v55, 16 }
 0x39b   : > { %v1466_v38 = vshrl.u32 %v1427_v49, 16  ;;  %v1392_v41 = vadd.f32 %v3027_v24, %v1327_v30  ;;  %v1330_v43 = vadd.f32 %v2359_v10, %v3044_v31  ;;  %1656 = vrot.lane.b32.xlu0 %v3145_v28, %s2514_s12  ;;  %2438 = vmatprep.mubr.msk.bf16.mxu1 %vm938_vm11, %v2278_v34  ;;  %v1469_v31 = vshll.u32 %v1427_v49, 16 }
 0x39c   : > { %v1464_v48 = vor.u32 %v1462_v29, %v1461_v37  ;;  %v1536_v16 = vrot.slane %v1534_v27, 1  ;;  %v1532_v19 = vshrl.u32 %v3158_v55, 16 }
 0x39d   : > { %v1468_v53 = vrot.slane %v1466_v38, 7  ;;  %vm1404_vm4 = vcmp.ge.f32.partialorder %v1392_v41, 0.0  ;;  %v1412_v17 = vmul.f32 0.2, %v1392_v41  ;;  %v1395_v54 = vadd.f32 %v3031_v25, %v1330_v43  ;;  %1608 = vrot.lane.b32.xlu1 %v3158_v55, %s2514_s12 }
 0x39e   : > { %v1498_v24 = vsel %vm2713_vm9, 0, %v1464_v48  ;;  %v1529_v25 = vrot.slane %v1527_v40, 1  ;;  %v3220_v49 = vor.u32 %v1536_v16, %v1532_v19 }
 0x39f   : > { %v3174_v39 = vsel %vm2718_vm10, %v1498_v24, 0  ;;  %v1420_v59 = vsel %vm1404_vm4, %v1392_v41, %v1412_v17  ;;  %vm1405_vm5 = vcmp.ge.f32.partialorder %v1395_v54, 0.0  ;;  %1561 = vrot.lane.b32.xlu0 %v3145_v28, %s2511_s16  ;;  %v1471_v21 = vor.u32 %v1469_v31, %v1468_v53 }
 0x3a0   : > { %v1428_v20 = vpack.c.bf16 %v1420_v59, %v1420_v59  ;;  %v1413_v35 = vmul.f32 0.2, %v1395_v54  ;;  %v1584_v23 = vrot.slane %v3174_v39, 1  ;;  %v3183_v32 = vor.u32 %v1529_v25, %v1525_v33 }
 0x3a1   : > { %1632 = vrot.lane.b32.xlu1 %v1583_v56, %s2511_s16  ;;  %v1499_v1 = vsel %vm2713_vm9, 0, %v1471_v21  ;;  %v1541_v22 = vshll.u32 %v3174_v39, 16  ;;  %v1539_v30 = vshrl.u32 %v3174_v39, 16 }
 0x3a2   : > { %v1473_v60 = vshrl.u32 %v1428_v20, 16  ;;  %v1421_v52 = vsel %vm1405_vm5, %v1395_v54, %v1413_v35  ;;  %v2281_v61 = vcombine.low %v1583_v56, %v1584_v23  ;;  %v1476_v5 = vshll.u32 %v1428_v20, 16 }
 0x3a3   : > { %v1429_v47 = vpack.c.bf16 %v1421_v52, %v1421_v52  ;;  %1606 = vrot.lane.b32.xlu0 %v3138_v7, %s2514_s12  ;;  %v3192_v58 = vsel %vm2718_vm10, %v1499_v1, 0 }
 0x3a4   : > { %v1475_v2 = vrot.slane %v1473_v60, 7  ;;  %2439 = vmatmul.mubr.msk.bf16.vlgmr.msra.gmra.mrb[16].mxu1 %vm938_vm11, %v2281_v61  ;;  %v1585_v26 = vrot.slane %v3192_v58, 1  ;;  %v1548_v10 = vshll.u32 %v3192_v58, 16  ;;  %v1546_v46 = vshrl.u32 %v3192_v58, 16 }
 0x3a5   : > { %v1480_v51 = vshrl.u32 %v1429_v47, 16  ;;  %1658 = vrot.lane.b32.xlu1 %v3183_v32, %s2514_s12  ;;  %v1483_v42 = vshll.u32 %v1429_v47, 16 }
 0x3a6   : > { %v1478_v44 = vor.u32 %v1476_v5, %v1475_v2  ;;  %v1550_v36 = vrot.slane %v1548_v10, 1 }
 0x3a7   : > { %v1482_v45 = vrot.slane %v1480_v51, 7  ;;  %1630 = vrot.lane.b32.xlu0 %v1582_v14, %s2511_s16 }
 0x3a8   : > { %v1500_v9 = vsel %vm2713_vm9, 0, %v1478_v44  ;;  %v3245_v37 = vor.u32 %v1550_v36, %v1546_v46 }
 0x3a9   : > { %v3199_v0 = vsel %vm2718_vm10, %v1500_v9, 0  ;;  %v1485_v11 = vor.u32 %v1483_v42, %v1482_v45  ;;  %1563 = vrot.lane.b32.xlu1 %v3183_v32, %s2511_s16 }
 0x3aa   : > { %v1586_v12 = vrot.slane %v3199_v0, 1  ;;  %v1555_v29 = vshll.u32 %v3199_v0, 16  ;;  %v1553_v41 = vshrl.u32 %v3199_v0, 16 }
 0x3ab   : > { %v1501_v3 = vsel %vm2713_vm9, 0, %v1485_v11  ;;  %1646 = vrot.lane.b32.xlu0 %v3158_v55, %s2513_s24 }
 0x3ac   : > { %v2284_v14 = vcombine.low %v1585_v26, %v1586_v12  ;;  %v1509_v15 = vsel %vm2718_vm10, %v1501_v3, 0  ;;  %v1557_v38 = vrot.slane %v1555_v29, 1 }
 0x3ad   : > { %1648 = vrot.lane.b32.xlu1 %v3174_v39, %s2513_s24  ;;  %v1625_v6 = vrot.slane %v1509_v15, 1  ;;  %v1621_v40 = vshll.u32 %v1509_v15, 16  ;;  %v1619_v53 = vshrl.u32 %v1509_v15, 16 }
 0x3ae   : > { %2442 = vmatprep.mubr.msk.bf16.mxu1 %vm938_vm11, %v2284_v14  ;;  %v3257_v43 = vor.u32 %v1557_v38, %v1553_v41 }
 0x3af   : > { %1593 = vrot.lane.b32.xlu0 %v1583_v56, %s2513_s24  ;;  %v2287_v18 = vcombine.low %v1625_v6, %v2646_v50  ;;  %v1543_v50 = vrot.slane %v1541_v22, 1  ;;  %v1623_v48 = vrot.slane %v1621_v40, 1 }
 0x3b1   : > { %2443 = vmatmul.mubr.msk.bf16.gmra.mrb[20].mxu1 %vm938_vm11, %v2287_v18  ;;  %1595 = vrot.lane.b32.xlu1 %v1584_v23, %s2513_s24  ;;  %v3236_v34 = vor.u32 %v1543_v50, %v1539_v30  ;;  %v3265_v17 = vor.u32 %v1623_v48, %v1619_v53 }
 0x3b3   : > { %1660 = vrot.lane.b32.xlu0 %v3220_v49, %s2514_s12 }
 0x3b5   : > { %1612 = vrot.lane.b32.xlu1 %v3192_v58, %s2514_s12 }
 0x3b7   : > { %1565 = vrot.lane.b32.xlu0 %v3220_v49, %s2511_s16 }
 0x3b9   : > { %1636 = vrot.lane.b32.xlu1 %v1585_v26, %s2511_s16 }
 0x3bb   : > { %1610 = vrot.lane.b32.xlu0 %v3174_v39, %s2514_s12 }
 0x3bd   : > { %1597 = vrot.lane.b32.xlu1 %v1585_v26, %s2513_s24 }
 0x3bf   : > { %1634 = vrot.lane.b32.xlu0 %v1584_v23, %s2511_s16 }
 0x3c1   : > { %1662 = vrot.lane.b32.xlu1 %v3236_v34, %s2514_s12 }
 0x3c3   : > { %1650 = vrot.lane.b32.xlu0 %v3192_v58, %s2513_s24 }
 0x3c5   : > { %1567 = vrot.lane.b32.xlu1 %v3236_v34, %s2511_s16 }
 0x3c7   : > { %1664 = vrot.lane.b32.xlu0 %v3245_v37, %s2514_s12 }
 0x3c9   : > { %1652 = vrot.lane.b32.xlu1 %v3199_v0, %s2513_s24 }
 0x3cb   : > { %1569 = vrot.lane.b32.xlu0 %v3245_v37, %s2511_s16 }
 0x3cd   : > { %1640 = vrot.lane.b32.xlu1 %v1625_v6, %s2511_s16 }
 0x3cf   : > { %1638 = vrot.lane.b32.xlu0 %v1586_v12, %s2511_s16 }
 0x3d1   : > { %1666 = vrot.lane.b32.xlu1 %v3257_v43, %s2514_s12 }
 0x3d3   : > { %1654 = vrot.lane.b32.xlu0 %v1509_v15, %s2513_s24 }
 0x3d5   : > { %1571 = vrot.lane.b32.xlu1 %v3257_v43, %s2511_s16 }
 0x3d7   : > { %1599 = vrot.lane.b32.xlu0 %v1586_v12, %s2513_s24 }
 0x3d9   : > { %1668 = vrot.lane.b32.xlu1 %v3265_v17, %s2514_s12 }
 0x3db   : > { %1614 = vrot.lane.b32.xlu0 %v3199_v0, %s2514_s12 }
 0x3dd   : > { %1616 = vrot.lane.b32.xlu1 %v1509_v15, %s2514_s12  ;;  %s2314_s12 = sshll.u32 %s3394_s28, 6 }
 0x3de   : > { %s3351_s14 = scalar_lea.vmem %s3388_s8, %s2314_s12 }
 0x3e9   : > { %v1603_v54 = vpop.permute.xlu0 %1602 }
 0x3eb   : > { %v1643_v24 = vpop.permute.xlu1 %1642 }
 0x3ed   : > { %v1627_v31 = vpop.permute.xlu0 %1626 }
 0x3ee   : > { %v1716_v1 = vsel %vm938_vm11, %v3094_v13, %v1627_v31  ;;  %v1699_v13 = vsel %vm972_vm13, %v2966_v4, %v1603_v54 }
 0x3ef   : > { %v1588_v56 = vpop.permute.xlu1 %1587  ;;  %v1739_v42 = vsel %vm955_vm12, %v1716_v1, %v1643_v24 }
 0x3f1   : > { %v1590_v59 = vpop.permute.xlu0 %1589 }
 0x3f3   : > { %v1605_v25 = vpop.permute.xlu1 %1604 }
 0x3f5   : > { %v1560_v21 = vpop.permute.xlu0 %1559 }
 0x3f6   : > { %v1671_v52 = vsel %vm938_vm11, %v3052_v62, %v1560_v21 }
 0x3f7   : > { %v1629_v20 = vpop.permute.xlu1 %1628  ;;  %v1685_v2 = vsel %vm955_vm12, %v1671_v52, %v1588_v56 }
 0x3f8   : > { %v1719_v51 = vsel %vm938_vm11, %v3145_v28, %v1629_v20  ;;  %v1701_v44 = vsel %vm972_vm13, %v1685_v2, %v1605_v25 }
 0x3f9   : > { %v2276_v12 = vcombine.low %v1699_v13, %v1701_v44 }
 0x409   : > { %v1645_v35 = vpop.permute.xlu0 %1644 }
 0x40a   : > { %v1741_v45 = vsel %vm955_vm12, %v1719_v51, %v1645_v35 }
 0x40b   : > { %v1592_v23 = vpop.permute.xlu1 %1591 }
 0x40d   : > { %v1657_v33 = vpop.permute.xlu0 %1656 }
 0x40e   : > { %v1754_v62 = vsel %vm972_vm13, %v1739_v42, %v1657_v33 }
 0x40f   : > { %v1609_v60 = vpop.permute.xlu1 %1608 }
 0x411   : > { %v1562_v47 = vpop.permute.xlu0 %1561 }
 0x412   : > { %v1673_v36 = vsel %vm938_vm11, %v3060_v63, %v1562_v47 }
 0x413   : > { %v1633_v61 = vpop.permute.xlu1 %1632  ;;  %v1687_v53 = vsel %vm955_vm12, %v1673_v36, %v1590_v59 }
 0x414   : > { %v1725_v29 = vsel %vm938_vm11, %v3220_v49, %v1633_v61 }
 0x415   : > { %v1607_v5 = vpop.permute.xlu0 %1606 }
 0x416   : > { %v1703_v24 = vsel %vm972_vm13, %v1687_v53, %v1607_v5 }
 0x417   : > { %v1659_v9 = vpop.permute.xlu1 %1658 }
 0x418   : > { %v1756_v11 = vsel %vm972_vm13, %v1741_v45, %v1659_v9 }
 0x419   : > { %v2277_v27 = vcombine.low %v1754_v62, %v1756_v11  ;;  %v1631_v26 = vpop.permute.xlu0 %1630 }
 0x41a   : > { %v1722_v38 = vsel %vm938_vm11, %v3183_v32, %v1631_v26 }
 0x41b   : > { %v1564_v3 = vpop.permute.xlu1 %1563  ;;  %2022 = vmatprep.mubr.bf16.mxu0 %v2277_v27 }
 0x41c   : > { %2023 = vmatmul.mubr.bf16.vlgmr.msra.gmra.mrb[16].mxu0 %v2276_v12  ;;  %v1675_v50 = vsel %vm938_vm11, %v3138_v7, %v1564_v3 }
 0x41d   : > { %v1647_v28 = vpop.permute.xlu0 %1646  ;;  %v1689_v4 = vsel %vm955_vm12, %v1675_v50, %v1592_v23 }
 0x41e   : > { %v1743_v41 = vsel %vm955_vm12, %v1722_v38, %v1647_v28  ;;  %v1705_v7 = vsel %vm972_vm13, %v1689_v4, %v1609_v60 }
 0x41f   : > { %v1649_v14 = vpop.permute.xlu1 %1648  ;;  %v2279_v56 = vcombine.low %v1703_v24, %v1705_v7 }
 0x420   : > { %v1745_v40 = vsel %vm955_vm12, %v1725_v29, %v1649_v14 }
 0x421   : > { %v1594_v15 = vpop.permute.xlu0 %1593 }
 0x423   : > { %v1596_v6 = vpop.permute.xlu1 %1595 }
 0x425   : > { %v1661_v16 = vpop.permute.xlu0 %1660 }
 0x426   : > { %v1758_v54 = vsel %vm972_vm13, %v1743_v41, %v1661_v16 }
 0x427   : > { %v1613_v18 = vpop.permute.xlu1 %1612 }
 0x429   : > { %v1566_v19 = vpop.permute.xlu0 %1565 }
 0x42a   : > { %v1677_v33 = vsel %vm938_vm11, %v3158_v55, %v1566_v19 }
 0x42b   : > { %v1637_v22 = vpop.permute.xlu1 %1636  ;;  %v1691_v5 = vsel %vm955_vm12, %v1677_v33, %v1594_v15 }
 0x42c   : > { %v1731_v52 = vsel %vm938_vm11, %v3245_v37, %v1637_v22 }
 0x42d   : > { %v1611_v30 = vpop.permute.xlu0 %1610 }
 0x42e   : > { %v1707_v44 = vsel %vm972_vm13, %v1691_v5, %v1611_v30 }
 0x42f   : > { %v1598_v10 = vpop.permute.xlu1 %1597 }
 0x431   : > { %v1635_v46 = vpop.permute.xlu0 %1634 }
 0x432   : > { %v1728_v47 = vsel %vm938_vm11, %v3236_v34, %v1635_v46  ;;  %v3343_v46 = vld [vmem:[%s3387_s7] ss:$0 sm:$0xff] }
 0x433   : > { %v1663_v48 = vpop.permute.xlu1 %1662 }
 0x434   : > { %v1760_v63 = vsel %vm972_vm13, %v1745_v40, %v1663_v48 }
 0x435   : > { %v2280_v31 = vcombine.low %v1758_v54, %v1760_v63  ;;  %v1651_v49 = vpop.permute.xlu0 %1650 }
 0x436   : > { %v1747_v61 = vsel %vm955_vm12, %v1728_v47, %v1651_v49 }
 0x437   : > { %v1568_v25 = vpop.permute.xlu1 %1567  ;;  %2030 = vmatprep.mubr.bf16.mxu0 %v2280_v31 }
 0x438   : > { %2031 = vmatmul.mubr.bf16.gmra.mrb[20].mxu0 %v2279_v56  ;;  %v1679_v20 = vsel %vm938_vm11, %v3174_v39, %v1568_v25 }
 0x439   : > { %v1665_v32 = vpop.permute.xlu0 %1664  ;;  %v1693_v59 = vsel %vm955_vm12, %v1679_v20, %v1596_v6 }
 0x43a   : > { %v1709_v39 = vsel %vm972_vm13, %v1693_v59, %v1613_v18  ;;  %v1762_v51 = vsel %vm972_vm13, %v1747_v61, %v1665_v32 }
 0x43b   : > { %v1653_v21 = vpop.permute.xlu1 %1652  ;;  %v2282_v42 = vcombine.low %v1707_v44, %v1709_v39 }
 0x43c   : > { %v1749_v1 = vsel %vm955_vm12, %v1731_v52, %v1653_v21 }
 0x43d   : > { %v1570_v35 = vpop.permute.xlu0 %1569 }
 0x43e   : > { %v1681_v12 = vsel %vm938_vm11, %v3192_v58, %v1570_v35 }
 0x43f   : > { %v1641_v23 = vpop.permute.xlu1 %1640 }
 0x440   : > { %v1737_v34 = vsel %vm938_vm11, %v3265_v17, %v1641_v23 }
 0x441   : > { %v1639_v60 = vpop.permute.xlu0 %1638  ;;  %v1752_v62 = vsel %vm955_vm12, %v1737_v34, %v2992_v57 }
 0x442   : > { %v1734_v13 = vsel %vm938_vm11, %v3257_v43, %v1639_v60  ;;  %v1767_v3 = vsel %vm972_vm13, %v1752_v62, %v3010_v8  ;;  %v1695_v43 = vsel %vm955_vm12, %v1681_v12, %v1598_v10 }
 0x443   : > { %v1667_v2 = vpop.permute.xlu1 %1666 }
 0x444   : > { %v1764_v55 = vsel %vm972_vm13, %v1749_v1, %v1667_v2 }
 0x445   : > { %v2283_v45 = vcombine.low %v1762_v51, %v1764_v55  ;;  %v1655_v37 = vpop.permute.xlu0 %1654 }
 0x446   : > { %v1751_v27 = vsel %vm955_vm12, %v1734_v13, %v1655_v37 }
 0x447   : > { %v1572_v9 = vpop.permute.xlu1 %1571  ;;  %2038 = vmatprep.mubr.bf16.mxu0 %v2283_v45 }
 0x448   : > { %2039 = vmatmul.mubr.bf16.gmra.mrb[24].mxu0 %v2282_v42  ;;  %v1683_v17 = vsel %vm938_vm11, %v3199_v0, %v1572_v9 }
 0x449   : > { %v1600_v11 = vpop.permute.xlu0 %1599 }
 0x44a   : > { %v1697_v15 = vsel %vm955_vm12, %v1683_v17, %v1600_v11 }
 0x44b   : > { %v1669_v26 = vpop.permute.xlu1 %1668 }
 0x44c   : > { %v1766_v28 = vsel %vm972_vm13, %v1751_v27, %v1669_v26 }
 0x44d   : > { %v2286_v14 = vcombine.low %v1766_v28, %v1767_v3  ;;  %v1615_v57 = vpop.permute.xlu0 %1614 }
 0x44e   : > { %v1711_v16 = vsel %vm972_vm13, %v1695_v43, %v1615_v57 }
 0x44f   : > { %v1617_v6 = vpop.permute.xlu1 %1616  ;;  %2046 = vmatprep.mubr.bf16.mxu0 %v2286_v14 }
 0x450   : > { %v1713_v58 = vsel %vm972_vm13, %v1697_v15, %v1617_v6 }
 0x451   : > { %v2285_v18 = vcombine.low %v1711_v16, %v1713_v58 }
 0x453   : > { %2047 = vmatmul.mubr.bf16.gmra.mrb[28].mxu0 %v2285_v18 }
 0x477   : > { %v2440_v0 = vpop.f32.mrb[16].mxu1 }
 0x478   : > { %v2089_v19 = vpop.f32.mrb[17].mxu1 }
 0x479   : > { %v2441_v8 = vpop.f32.mrb[18].mxu1 }
 0x47a   : > { %v2092_v22 = vpop.f32.mrb[19].mxu1 }
 0x484   : > { %v3336_v50 = vpop.f32.mrb[20].mxu1 }
 0x485   : > { %v2105_v30 = vpop.f32.mrb[21].mxu1 }
 0x486   : > { %v3338_v4 = vpop.f32.mrb[22].mxu1 }
 0x487   : > { %v2108_v36 = vpop.f32.mrb[23].mxu1 }
 0x4ef   : > { %v2382_v10 = vpop.f32.mrb[16].mxu0 }
 0x4f0   : > { %v2383_v29 = vpop.f32.mrb[17].mxu0 }
 0x4f1   : > { %v2384_v38 = vadd.f32 %v2383_v29, %v2382_v10  ;;  %v2385_v41 = vpop.f32.mrb[18].mxu0 }
 0x4f2   : > { %v2386_v40 = vpop.f32.mrb[19].mxu0 }
 0x4f3   : > { %v2025_v48 = vadd.f32 %v2384_v38, %v3343_v46  ;;  %v2387_v7 = vadd.f32 %v2386_v40, %v2385_v41 }
 0x4f5   : > { %v2090_v53 = vadd.f32 %v2089_v19, %v2025_v48  ;;  %v2028_v54 = vadd.f32 %v2387_v7, %v3343_v46 }
 0x4f7   : > { %vm2120_vm6 = vcmp.ge.f32.partialorder %v2090_v53, 0.0  ;;  %v2128_v63 = vmul.f32 0.2, %v2090_v53  ;;  %v2093_v24 = vadd.f32 %v2092_v22, %v2028_v54 }
 0x4f9   : > { %v2136_v31 = vsel %vm2120_vm6, %v2090_v53, %v2128_v63  ;;  %vm2121_vm7 = vcmp.ge.f32.partialorder %v2093_v24, 0.0  ;;  %v2129_v49 = vmul.f32 0.2, %v2093_v24 }
 0x4fa   : > { %2144 = vst.msk [vmem:[%s3351_s14] sm:$0xff] %vm938_vm11, %v2136_v31 }
 0x4fb   : > { %v2137_v56 = vsel %vm2121_vm7, %v2093_v24, %v2129_v49 }
 0x4fc   : > { %2145 = vst.msk [vmem:[%s3351_s14 + $0x8] sm:$0xff] %vm938_vm11, %v2137_v56 }
 0x50b   : > { %v2388_v25 = vpop.f32.mrb[20].mxu0 }
 0x50c   : > { %v2389_v32 = vpop.f32.mrb[21].mxu0 }
 0x50d   : > { %v2390_v21 = vadd.f32 %v2389_v32, %v2388_v25  ;;  %v2391_v20 = vpop.f32.mrb[22].mxu0 }
 0x50e   : > { %v2392_v35 = vpop.f32.mrb[23].mxu0 }
 0x50f   : > { %v2033_v23 = vadd.f32 %v2390_v21, %v3343_v46  ;;  %v2393_v59 = vadd.f32 %v2392_v35, %v2391_v20 }
 0x511   : > { %v2098_v33 = vadd.f32 %v2440_v0, %v2033_v23  ;;  %v2036_v60 = vadd.f32 %v2393_v59, %v3343_v46 }
 0x513   : > { %vm2122_vm8 = vcmp.ge.f32.partialorder %v2098_v33, 0.0  ;;  %v2130_v52 = vmul.f32 0.2, %v2098_v33  ;;  %v2101_v47 = vadd.f32 %v2441_v8, %v2036_v60 }
 0x515   : > { %v2138_v61 = vsel %vm2122_vm8, %v2098_v33, %v2130_v52  ;;  %vm2123_vm9 = vcmp.ge.f32.partialorder %v2101_v47, 0.0  ;;  %v2131_v1 = vmul.f32 0.2, %v2101_v47 }
 0x516   : > { %2146 = vst.msk [vmem:[%s3351_s14 + $0x10] sm:$0xff] %vm938_vm11, %v2138_v61 }
 0x517   : > { %v2139_v2 = vsel %vm2123_vm9, %v2101_v47, %v2131_v1 }
 0x518   : > { %2147 = vst.msk [vmem:[%s3351_s14 + $0x18] sm:$0xff] %vm938_vm11, %v2139_v2 }
 0x51b   : > { %v2394_v39 = vpop.f32.mrb[24].mxu0 }
 0x51c   : > { %v2395_v5 = vpop.f32.mrb[25].mxu0 }
 0x51d   : > { %v2396_v51 = vadd.f32 %v2395_v5, %v2394_v39  ;;  %v2397_v55 = vpop.f32.mrb[26].mxu0 }
 0x51e   : > { %v2398_v44 = vpop.f32.mrb[27].mxu0 }
 0x51f   : > { %v2041_v45 = vadd.f32 %v2396_v51, %v3343_v46  ;;  %v2399_v37 = vadd.f32 %v2398_v44, %v2397_v55 }
 0x521   : > { %v2106_v34 = vadd.f32 %v2105_v30, %v2041_v45  ;;  %v2044_v42 = vadd.f32 %v2399_v37, %v3343_v46 }
 0x523   : > { %vm2124_vm10 = vcmp.ge.f32.partialorder %v2106_v34, 0.0  ;;  %v2132_v9 = vmul.f32 0.2, %v2106_v34  ;;  %v2109_v62 = vadd.f32 %v2108_v36, %v2044_v42 }
 0x525   : > { %v2140_v11 = vsel %vm2124_vm10, %v2106_v34, %v2132_v9  ;;  %vm2125_vm12 = vcmp.ge.f32.partialorder %v2109_v62, 0.0  ;;  %v2133_v13 = vmul.f32 0.2, %v2109_v62 }
 0x526   : > { %2148 = vst.msk [vmem:[%s3351_s14 + $0x20] sm:$0xff] %vm938_vm11, %v2140_v11  ;;  %v2400_v27 = vpop.f32.mrb[28].mxu0 }
 0x527   : > { %v2141_v26 = vsel %vm2125_vm12, %v2109_v62, %v2133_v13  ;;  %v2401_v12 = vpop.f32.mrb[29].mxu0 }
 0x528   : > { %2149 = vst.msk [vmem:[%s3351_s14 + $0x28] sm:$0xff] %vm938_vm11, %v2141_v26  ;;  %v2402_v17 = vadd.f32 %v2401_v12, %v2400_v27  ;;  %v2403_v3 = vpop.f32.mrb[30].mxu0 }
 0x529   : > { %v2404_v28 = vpop.f32.mrb[31].mxu0 }
 0x52a   : > { %v2049_v14 = vadd.f32 %v2402_v17, %v3343_v46  ;;  %v2405_v57 = vadd.f32 %v2404_v28, %v2403_v3 }
 0x52c   : > { %v2114_v15 = vadd.f32 %v3336_v50, %v2049_v14  ;;  %v2052_v43 = vadd.f32 %v2405_v57, %v3343_v46 }
 0x52e   : > { %vm2126_vm13 = vcmp.ge.f32.partialorder %v2114_v15, 0.0  ;;  %v2134_v6 = vmul.f32 0.2, %v2114_v15  ;;  %v2117_v16 = vadd.f32 %v3338_v4, %v2052_v43 }
 0x530   : > { %v2142_v58 = vsel %vm2126_vm13, %v2114_v15, %v2134_v6  ;;  %vm2127_vm14 = vcmp.ge.f32.partialorder %v2117_v16, 0.0  ;;  %v2135_v18 = vmul.f32 0.2, %v2117_v16 }
 0x531   : > { %2150 = vst.msk [vmem:[%s3351_s14 + $0x30] sm:$0xff] %vm938_vm11, %v2142_v58 }
 0x532   : > { %v2143_v0 = vsel %vm2127_vm14, %v2117_v16, %v2135_v18 }
 0x533   : > { %2151 = vst.msk [vmem:[%s3351_s14 + $0x38] sm:$0xff] %vm938_vm11, %v2143_v0 }
 0x534 PF: > { %s18_s27 = sadd.s32 1, %s2505_s27  }
 0x535   : > { %p15_p4 = scmp.ge.s32.totalorder %s18_s27, 4  }
 0x537   :  { %17 = sbr.rel (!%p15_p4) target bundleno = 1 (0x1), region = 85 }

</bundles_post_ra>
